<compile_context>
chip_gen: v6e
topology: v6e:2x2x1
jax: 0.10.0
libtpu: 0.0.40
codegen_flags: <defaults>
</compile_context>

<pallas_src>
import numpy as np
import jax
import jax.numpy as jnp
from jax.experimental import pallas as pl
from jax.experimental.pallas import tpu as pltpu


def _cdiv(a, b):
    return -(-a // b)


# ----------------------------------------------------------------------------
# Pallas kernel: batched per-group contrastive row losses, multi-task.
#   tid_ref  : (num_blocks,) int32 SMEM  task id of each group-block (prefetch)
#   z_ref    : (Gb, N, D)  bf16 slab of Gb groups of N embeddings of dim D
#   bias_ref : (1, N, N)   f32 additive bias of this block's task:
#                          -1e30 on the diagonal and on padded columns, 0 else
#   pn_ref   : (1, N, N)   f32 positives mask of this block's task, diag and
#                          padded entries zeroed, pre-divided by the per-row
#                          positive count (so each valid row sums to 1)
#   o_ref    : (Gb, N)     row i of group g =
#                          lse_gi - sum_j sim_gij * pn_ij
# This reproduces the torch tril/triu "remove-diagonal" + log_softmax + masked
# average exactly (the (N, N-1) diag-removed matrix is equivalent to masking
# the diagonal with -inf before the softmax and zeroing it in the mask, and
# sum_j pn_ij == 1 folds the (lse - sim) subtraction into a single term).
# ----------------------------------------------------------------------------
def _contrastive_rows_kernel(tid_ref, z_ref, bias_ref, pn_ref, o_ref):
    del tid_ref                                              # used only in index maps
    z = z_ref[...]                                           # (Gb, N, D) bf16
    # Batched similarity on the MXU, f32 accumulation; no explicit transpose.
    sim = jnp.einsum("gnd,gmd->gnm", z, z,
                     preferred_element_type=jnp.float32)     # (Gb, N, N) f32
    sim_nd = sim + bias_ref[0]                               # exclude diag / padding
    m = jnp.max(sim_nd, axis=-1, keepdims=True)
    lse = m[..., 0] + jnp.log(jnp.sum(jnp.exp(sim_nd - m), axis=-1))   # (Gb, N)
    # sum_j (lse - sim_ij) * pn_ij == lse - sum_j sim_ij * pn_ij  (sum_j pn_ij = 1)
    o_ref[...] = lse - jnp.sum(sim * pn_ref[0], axis=-1)     # (Gb, N)


def _choose_group_block(g_list, n, d):
    """Groups per grid step: VMEM-budget-aware, sublane-aligned, >=2 steps."""
    # f32 softmax temporaries (~3 (n,n) arrays per group), double-buffered bf16
    # z input block, double-buffered f32 output block.
    per_group = 3 * n * n * 4 + 2 * n * d * 2 + 2 * n * 4
    fixed = 2 * 2 * n * n * 4          # two (n,n) f32 mask blocks, double-buffered
    budget = 20 * 1024 * 1024          # conservative vs the 48 MiB limit (v7x: 64 MiB VMEM)
    gb = (max(budget - fixed, 0) // per_group // 8) * 8
    gb = max(8, gb)                    # sublane-aligned floor; fine for the N ~ O(100)
                                       # of this model (N-tiling would be needed beyond)
    g_max = max(g_list)
    gb = min(gb, max(8, _cdiv(g_max, 8) * 8))   # no point exceeding the largest task
    # Guarantee >= 2 grid steps when possible so the "parallel" axis can shard
    # across both v7x TensorCores (and the pipeline has something to overlap).
    if sum(_cdiv(g, gb) for g in g_list) < 2 and gb > 8:
        gb = max(8, ((gb // 2 + 7) // 8) * 8)
    return int(gb)


def batched_contrastive_means(tasks):
    """tasks: list of (zb, pmask); zb (G_i, N_i, D), pmask (N_i, N_i) with the
    diagonal already zeroed.  Returns a list of per-task scalar mean row losses,
    computed by a SINGLE pallas_call over all tasks (pyramid levels)."""
    D = int(tasks[0][0].shape[-1])
    n_max = max(int(t[0].shape[1]) for t in tasks)
    g_list = [int(t[0].shape[0]) for t in tasks]
    gb = _choose_group_block(g_list, n_max, D)

    z_parts, bias_parts, pn_parts, tids, meta = [], [], [], [], []
    row_off = 0
    eye = jnp.eye(n_max, dtype=bool)
    cols = jnp.arange(n_max)
    for i, (zb, pmask) in enumerate(tasks):
        G_i, N_i = int(zb.shape[0]), int(zb.shape[1])
        pmask = pmask.astype(jnp.float32)
        # Fold the per-row 1/num_positives normalization into the mask.  Rows
        # with zero positives give NaN, matching the torch 0/0 behaviour.
        cnt = jnp.sum(pmask, axis=-1, keepdims=True)
        p_scaled = pmask / cnt
        p_pad = jnp.zeros((n_max, n_max), jnp.float32).at[:N_i, :N_i].set(p_scaled)
        bias = jnp.where(eye | (cols[None, :] >= N_i),
                         jnp.float32(-1e30), jnp.float32(0.0))
        g_pad = _cdiv(G_i, gb) * gb
        z_pad = jnp.zeros((g_pad, n_max, D), jnp.bfloat16)
        z_pad = z_pad.at[:G_i, :N_i, :].set(zb.astype(jnp.bfloat16))
        z_parts.append(z_pad)
        bias_parts.append(bias)
        pn_parts.append(p_pad)
        tids.extend([i] * (g_pad // gb))
        meta.append((row_off, G_i, N_i))
        row_off += g_pad

    z_all = jnp.concatenate(z_parts, axis=0)              # (G_total_pad, n_max, D) bf16
    bias_all = jnp.stack(bias_parts, axis=0)              # (L, n_max, n_max) f32
    pn_all = jnp.stack(pn_parts, axis=0)                  # (L, n_max, n_max) f32
    tid = jnp.asarray(tids, dtype=jnp.int32)              # (num_blocks,)
    num_blocks = len(tids)
    g_total = int(z_all.shape[0])

    rows = pl.pallas_call(
        _contrastive_rows_kernel,
        out_shape=jax.ShapeDtypeStruct((g_total, n_max), jnp.float32),
        grid_spec=pltpu.PrefetchScalarGridSpec(
            num_scalar_prefetch=1,
            grid=(num_blocks,),
            in_specs=[
                pl.BlockSpec((gb, n_max, D), lambda g, t: (g, 0, 0)),
                pl.BlockSpec((1, n_max, n_max), lambda g, t: (t[g], 0, 0)),
                pl.BlockSpec((1, n_max, n_max), lambda g, t: (t[g], 0, 0)),
            ],
            out_specs=pl.BlockSpec((gb, n_max), lambda g, t: (g, 0)),
        ),
        compiler_params=pltpu.CompilerParams(
            dimension_semantics=("parallel",),
            vmem_limit_bytes=48 * 1024 * 1024,   # stays inside v7x's 64 MiB VMEM
        ),
    )(tid, z_all, bias_all, pn_all)

    # Slice off padded groups / padded rows per task before the per-task mean.
    return [jnp.mean(rows[off:off + g, :n]) for (off, g, n) in meta]


# ----------------------------------------------------------------------------
# Loss glue (same semantics as the torch code), batching all pyramid levels of
# both contrastive terms into ONE Pallas launch.
# ----------------------------------------------------------------------------
def max_pool_time(x):
    # x: (B, T, D) -> (B, T//2, D) == F.max_pool1d(x.transpose(1,2), 2).transpose(1,2)
    B, T, D = x.shape
    Tp = T // 2
    return jnp.max(x[:, : 2 * Tp].reshape(B, Tp, 2, D), axis=2)


def mixed_loss(self_embed, filtered_embed, filtered_labels_flat, aug_embed,
               temporal_unit, alpha=0.34, beta=0.33):
    d = 0
    tasks, weights = [], []

    # Hoisted: bf16 cast commutes with max-pool; supervised (N,N) mask is
    # level-independent (N = 3*B_valid is constant across the pyramid).
    z = filtered_embed.astype(jnp.bfloat16)
    aug = aug_embed.astype(jnp.bfloat16)
    se = self_embed

    sup_pmask = None
    if filtered_embed.shape[0] > 0 and filtered_embed.shape[0] // 3 > 1:
        lab = filtered_labels_flat.reshape(-1, 1)
        m = (lab == lab.T).astype(jnp.float32)
        sup_pmask = m * (1.0 - jnp.eye(m.shape[0], dtype=jnp.float32))

    def self_pmask(T):
        tl = jnp.tile(jnp.arange(T), 3).reshape(-1, 1)
        m = (tl == tl.T).astype(jnp.float32)
        return m * (1.0 - jnp.eye(3 * T, dtype=jnp.float32))

    while aug.shape[1] > 1:
        if alpha != 0 and z.shape[0] > 0 and sup_pmask is not None:
            # supervised_contrastive_loss_inter: z (3B, T, D) -> groups over time
            tasks.append((jnp.transpose(z, (1, 0, 2)), sup_pmask))
            weights.append(alpha)
        if d >= temporal_unit:
            if beta != 0 and aug.shape[1] > 1:
                # self_supervised_contrastive_loss: (3B, T, D) -> (B, 3T, D)
                B = aug.shape[0] // 3
                T = aug.shape[1]
                tasks.append((aug.reshape(B, T * 3, aug.shape[-1]), self_pmask(T)))
                weights.append(beta)
            # TODO(synk): temp_CL_soft / timelag_sigmoid / dup_matrix are undefined in the
            # reference source, so the (1 - alpha - beta) hierarchical soft-CL term is omitted.
        d += 1
        z = max_pool_time(z)
        aug = max_pool_time(aug)
        se = max_pool_time(se) if se.shape[1] > 1 else se

    if z.shape[1] == 1 and z.shape[0] > 0:
        if alpha != 0 and sup_pmask is not None:
            tasks.append((jnp.transpose(z, (1, 0, 2)), sup_pmask))
            weights.append(alpha)
        d += 1

    loss = jnp.float32(0.0)
    if tasks:
        means = batched_contrastive_means(tasks)   # single Pallas launch
        for w, mval in zip(weights, means):
            loss = loss + w * mval
    return loss / d


# ----------------------------------------------------------------------------
# Glue: cropping / masking augmentation / synthetic encoder (plain JAX / numpy).
# ----------------------------------------------------------------------------
def take_per_row(A, indx, num_elem):
    # A: (B, T, C) -> (B, C, num_elem)
    all_indx = np.asarray(indx)[:, None] + np.arange(num_elem)   # (B, num_elem)
    gathered = A[jnp.arange(A.shape[0])[:, None], jnp.asarray(all_indx)]
    return jnp.transpose(gathered, (0, 2, 1))


def mask_data_time_sync(data, ratio=0.3, mask_value=jnp.nan, num=2, rng=None):
    # Faithful to the torch version (which aliases `data`, so every copy carries
    # the cumulative masks of all augmentations).
    B, C, T = data.shape
    num_masked = int(T * ratio)
    masked = data
    for _ in range(num):
        idx = rng.permutation(T)[:num_masked]
        m = np.zeros(T, dtype=bool)
        m[idx] = True
        masked = jnp.where(jnp.asarray(m)[None, None, :], mask_value, masked)
    return jnp.concatenate([masked, masked, masked], axis=0)


def make_model(C, D, K, key):
    """Deterministic synthetic encoder: x (B, C, L) -> (embed (B, D, L), cls (B, K, L))."""
    k1, k2 = jax.random.split(key)
    w_emb = 0.1 * jax.random.normal(k1, (C, D), jnp.float32)
    w_cls = 0.1 * jax.random.normal(k2, (C, K), jnp.float32)

    def model(x):
        out = jnp.einsum("bcl,cd->bdl", x, w_emb)
        cls = jnp.einsum("bcl,ck->bkl", x, w_cls)
        return out, cls

    return model


class DesignLoss:
    def __init__(self, alpha=0.34, beta=0.33, temporal_unit=1, mask_ratio=0.05):
        self.alpha = alpha
        self.beta = beta
        self.temporal_unit = temporal_unit
        self.mask_ratio = mask_ratio

    def __call__(self, data, labels, model):
        # data: (B, C, T) float, labels: (B, L) float
        labels = labels[:, 0].reshape(-1, 1)                     # (B, 1)
        B, C, ts_l = data.shape
        rng = np.random.RandomState(0)                           # deterministic "np.random"

        crop_l = int(rng.randint(low=2 ** (self.temporal_unit + 1), high=ts_l + 1))
        crop_left = int(rng.randint(ts_l - crop_l + 1))
        crop_right = crop_left + crop_l
        crop_eleft = int(rng.randint(crop_left + 1))
        crop_eright = int(rng.randint(low=crop_right, high=ts_l + 1))
        crop_offset = rng.randint(low=-crop_eleft, high=ts_l - crop_eright + 1, size=B)

        data_t = jnp.transpose(data, (0, 2, 1))                  # (B, T, C)
        out1, class1 = model(take_per_row(data_t, crop_offset + crop_eleft,
                                          crop_right - crop_eleft))
        out2, class2 = model(take_per_row(data_t, crop_offset + crop_left,
                                          crop_eright - crop_left))
        out1 = jnp.transpose(out1, (0, 2, 1))[:, -crop_l:]       # (B, crop_l, D)
        out2 = jnp.transpose(out2, (0, 2, 1))[:, :crop_l]        # (B, crop_l, D)
        class1 = class1[:, :, -crop_l:]
        class2 = class2[:, :, :crop_l]
        self_embed = jnp.concatenate([out1, out2], axis=0)       # (2B, crop_l, D)

        aug_data = mask_data_time_sync(data, ratio=self.mask_ratio,
                                       mask_value=jnp.nan, num=2, rng=rng)  # (3B, C, T)
        aug_embed, aug_cls = model(aug_data)
        aug_embed = jnp.transpose(aug_embed, (0, 2, 1))          # (3B, T, D)

        labels_np = np.asarray(labels)
        valid = ~np.isnan(labels_np[:, 0])                       # (B,)
        valid3_idx = np.nonzero(np.tile(valid, 3))[0]
        filtered_embed = aug_embed[jnp.asarray(valid3_idx)]      # (3*B_valid, T, D)
        filtered_labels = labels_np[:, 0][valid]                 # (B_valid,)
        filtered_labels_flat = jnp.tile(jnp.asarray(filtered_labels), 3).astype(jnp.int32)
        aug_labels = jnp.tile(labels, (3, 1)).astype(jnp.int32)  # (3B, 1)

        loss_h = mixed_loss(self_embed, filtered_embed, filtered_labels_flat,
                            aug_embed, temporal_unit=self.temporal_unit,
                            alpha=self.alpha, beta=self.beta)
        return loss_h, filtered_embed, aug_cls, aug_labels


# ----------------------------------------------------------------------------
if __name__ == "__main__":
    key = jax.random.PRNGKey(0)
    k_data, k_model = jax.random.split(key)

    B, C, T = 2, 4, 16            # small shapes; note int(T * 0.05) == 0 -> no NaN masking
    D, K = 32, 5
    data = jax.random.normal(k_data, (B, C, T), jnp.float32)
    labels = jnp.array([[0.0, 0.0], [1.0, 1.0]], jnp.float32)    # (B, 2), label in column 0

    model = make_model(C, D, K, k_model)
    loss_mod = DesignLoss(alpha=0.34, beta=0.33, temporal_unit=1, mask_ratio=0.05)

    loss, filtered_embed, aug_cls, aug_labels = loss_mod(data, labels, model)
    loss = jax.block_until_ready(loss)
    jax.block_until_ready(filtered_embed)
    assert np.isfinite(float(loss)), f"loss is not finite: {loss}"
    print("KERNEL_OK")
</pallas_src>

<mosaic_0001>
module attributes {stable_mosaic.version = 11 : i64} {
  func.func @_contrastive_rows_kernel(%arg0: i32, %arg1: memref<8xi32, #tpu.memory_space<smem>>, %arg2: memref<16x24x32xbf16, #tpu.memory_space<vmem>>, %arg3: memref<1x24x24xf32, #tpu.memory_space<vmem>>, %arg4: memref<1x24x24xf32, #tpu.memory_space<vmem>>, %arg5: memref<16x24xf32, #tpu.memory_space<vmem>>) attributes {dimension_semantics = [#tpu.dimension_semantics<parallel>], iteration_bounds = array<i64: 8>, scalar_prefetch = 1 : i64, scratch_operands = 0 : i64, tpu.core_type = #tpu.core_type<tc>, window_params = [{transform_indices = @transform_0, window_bounds = array<i64: 16, 24, 32>}, {transform_indices = @transform_1, window_bounds = array<i64: 1, 24, 24>}, {transform_indices = @transform_2, window_bounds = array<i64: 1, 24, 24>}, {transform_indices = @transform_3, window_bounds = array<i64: 16, 24>}]} {
    %c0 = arith.constant 0 : index
    %c0_0 = arith.constant 0 : index
    %c0_1 = arith.constant 0 : index
    %0 = vector.load %arg2[%c0, %c0_0, %c0_1] : memref<16x24x32xbf16, #tpu.memory_space<vmem>>, vector<16x24x32xbf16>
    "tpu.trace_start"() <{level = 10 : i32, message = "gnd,gmd->gnm"}> : () -> ()
    %cst = arith.constant dense<0.000000e+00> : vector<16x24x24xf32>
    %1 = tpu.matmul %0, %0, %cst {dimension_numbers = #tpu.dot_dimension_numbers<[2], [2], [1], [1], [0, 0, 0, 1, 1, 1], [0], [0]>} : vector<16x24x32xbf16>, vector<16x24x32xbf16>, vector<16x24x24xf32> -> vector<16x24x24xf32>
    "tpu.trace_stop"() : () -> ()
    %c0_2 = arith.constant 0 : index
    %c0_3 = arith.constant 0 : index
    %c0_4 = arith.constant 0 : index
    %2 = vector.load %arg3[%c0_2, %c0_3, %c0_4] : memref<1x24x24xf32, #tpu.memory_space<vmem>>, vector<1x24x24xf32>
    %3 = vector.shape_cast %2 : vector<1x24x24xf32> to vector<24x24xf32>
    %4 = vector.shape_cast %3 : vector<24x24xf32> to vector<1x24x24xf32>
    %5 = vector.broadcast %4 : vector<1x24x24xf32> to vector<16x24x24xf32>
    %6 = arith.addf %1, %5 : vector<16x24x24xf32>
    %cst_5 = arith.constant dense<0xFF800000> : vector<16x24xf32>
    %7 = vector.multi_reduction <maximumf>, %6, %cst_5 [2] : vector<16x24x24xf32> to vector<16x24xf32>
    %8 = vector.shape_cast %7 : vector<16x24xf32> to vector<16x24x1xf32>
    %9 = vector.shape_cast %8 : vector<16x24x1xf32> to vector<16x24xf32>
    %10 = vector.broadcast %8 : vector<16x24x1xf32> to vector<16x24x24xf32>
    %11 = arith.subf %6, %10 : vector<16x24x24xf32>
    %12 = math.exp %11 : vector<16x24x24xf32>
    %cst_6 = arith.constant dense<0.000000e+00> : vector<16x24xf32>
    %13 = vector.multi_reduction <add>, %12, %cst_6 [2] : vector<16x24x24xf32> to vector<16x24xf32>
    %14 = math.log %13 : vector<16x24xf32>
    %15 = arith.addf %9, %14 : vector<16x24xf32>
    %c0_7 = arith.constant 0 : index
    %c0_8 = arith.constant 0 : index
    %c0_9 = arith.constant 0 : index
    %16 = vector.load %arg4[%c0_7, %c0_8, %c0_9] : memref<1x24x24xf32, #tpu.memory_space<vmem>>, vector<1x24x24xf32>
    %17 = vector.shape_cast %16 : vector<1x24x24xf32> to vector<24x24xf32>
    %18 = vector.shape_cast %17 : vector<24x24xf32> to vector<1x24x24xf32>
    %19 = vector.broadcast %18 : vector<1x24x24xf32> to vector<16x24x24xf32>
    %20 = arith.mulf %1, %19 : vector<16x24x24xf32>
    %cst_10 = arith.constant dense<0.000000e+00> : vector<16x24xf32>
    %21 = vector.multi_reduction <add>, %20, %cst_10 [2] : vector<16x24x24xf32> to vector<16x24xf32>
    %22 = arith.subf %15, %21 : vector<16x24xf32>
    %c0_11 = arith.constant 0 : index
    %c0_12 = arith.constant 0 : index
    %23 = vector.load %arg5[%c0_11, %c0_12] : memref<16x24xf32, #tpu.memory_space<vmem>>, vector<16x24xf32>
    tpu.vector_store %arg5[%c0_11, %c0_12], %22 {strides = array<i32>} : memref<16x24xf32, #tpu.memory_space<vmem>>, vector<16x24xf32>,
    return
  }
  func.func @transform_0(%arg0: i32, %arg1: memref<8xi32, #tpu.memory_space<smem>>) -> (i32, i32, i32) {
    %c0_i32 = arith.constant 0 : i32
    %c0_i32_0 = arith.constant 0 : i32
    %c0_i32_1 = arith.constant 0 : i32
    return %arg0, %c0_i32, %c0_i32_0 : i32, i32, i32
  }
  func.func @transform_1(%arg0: i32, %arg1: memref<8xi32, #tpu.memory_space<smem>>) -> (i32, i32, i32) {
    %0 = arith.index_cast %arg0 : i32 to index
    %1 = memref.load %arg1[%0] : memref<8xi32, #tpu.memory_space<smem>>
    %c0_i32 = arith.constant 0 : i32
    %c0_i32_0 = arith.constant 0 : i32
    %c0_i32_1 = arith.constant 0 : i32
    return %1, %c0_i32, %c0_i32_0 : i32, i32, i32
  }
  func.func @transform_2(%arg0: i32, %arg1: memref<8xi32, #tpu.memory_space<smem>>) -> (i32, i32, i32) {
    %0 = arith.index_cast %arg0 : i32 to index
    %1 = memref.load %arg1[%0] : memref<8xi32, #tpu.memory_space<smem>>
    %c0_i32 = arith.constant 0 : i32
    %c0_i32_0 = arith.constant 0 : i32
    %c0_i32_1 = arith.constant 0 : i32
    return %1, %c0_i32, %c0_i32_0 : i32, i32, i32
  }
  func.func @transform_3(%arg0: i32, %arg1: memref<8xi32, #tpu.memory_space<smem>>) -> (i32, i32) {
    %c0_i32 = arith.constant 0 : i32
    %c0_i32_0 = arith.constant 0 : i32
    return %arg0, %c0_i32 : i32, i32
  }
}

</mosaic_0001>

<bundles_post_ra>
// kernel: tpu_custom_call.1
= control target key start
LH: loop header
LB: loop body
LE: loop exit
PB: predicated region body
PF: predicated region fallthrough
CT: control target
= control target key end

     0   :  { %s4286_s0 = inlined_call_operand.vmem [shape: s32[8], index: 0, kind: input, shape index: {}]   ;;  %s4287_s1 = inlined_call_operand.vmem [shape: bf16[128,24,32], index: 1, kind: input, shape index: {}]   ;;  %s4288_s2 = inlined_call_operand.vmem [shape: f32[8,24,24], index: 2, kind: input, shape index: {}]   ;;  %s4289_s3 = inlined_call_operand.vmem [shape: f32[8,24,24], index: 3, kind: input, shape index: {}]   ;;  %s4290_s4 = inlined_call_operand.vmem [shape: f32[128,24], index: 4, kind: output, shape index: {}]  }
   0x1   :  { %s9_s17 = sshll.u32 %s4286_s0, 4  ;;  %s10_s17 = int_to_ptr.vmem [resolvable:$true] %s9_s17 }
   0x2   :  { %s3074_s18 = scalar_lea.vmem %s10_s17, 16  ;;  %p3079_p1 = scmp.lt.s32.totalorder %s10_s17, %s10_s17 }
   0x3   :  { %p3075_p0 = scmp.ne.s32.totalorder %s10_s17, %s3074_s18  ;;  %p3080_p2 = scmp.lt.s32.totalorder %s3074_s18, %s3074_s18 }
   0x5   :  { %p3081_p3 = por %p3080_p2, %p3079_p1 }
   0x7   :  { %p3082_p4 = pnand %p3081_p3, %p3075_p0 }
   0x9   :  { %3085 = shalt.err (!%p3082_p4)  }
   0xa   :  { %s3096_s19 = smov [#allocation3]  }
   0xb   :  { %12 = dma.vmem_to_smem %s10_s17, 16, %s3096_s19, [#allocation2] }
   0xc   :  { %3090 = dma.done.wait [#allocation2], 16 }
   0xd   :  { %3091 = vsyncadd [#allocation2], 4294967280 }
   0xe   :  { %14 = sfence }
   0xf   :  { %s3125_s20 = smov 0  }
  0x10 LB: > { %s3131_s0 = sadd.s32 4294967295, %s3094_s20   ;;  %p2538_p5 = scmp.ge.s32.totalorder %s3094_s20, 1  ;;  %s3094_s20 = sphi %s3125_s20, %s20_s20  }
  0x11   : > { %p174_p6 = scmp.lt.s32.totalorder %s3094_s20, 9 }
  0x13   : > { %p175_p7 = pnand %p2538_p5, %p174_p6 }
  0x15   : > { %178 = sbr.rel (%p175_p7) target bundleno = 738 (0x2e2), region = 32 }
  0x1a   : > { %s2539_s21 = sshll.u32 %s3131_s0, 4  ;;  %vm295_vm0 = vcmask 261120   ;;  %s218_s26 = sld [smem:[#allocation3 + %s3131_s0]]  ;;  %vm1331_vm1 = vcmask 195584   ;;  %vm2210_vm2 = vcmask 130112   ;;  %vm2217_vm3 = vcmask 195712  }
  0x1b   : > { %p212_p8 = scmp.lt.s32.totalorder %s2539_s21, 127  ;;  %s225_s27 = sld [smem:[#allocation3 + %s3131_s0]]  ;;  %vm2429_vm4 = vcmask 1041409   ;;  %vm2431_vm5 = vcmask 1042434   ;;  %vm2433_vm6 = vcmask 1043459   ;;  %vm2435_vm7 = vcmask 1044484  }
  0x1c   : > { %vm2437_vm8 = vcmask 1045509   ;;  %s2543_s10 = sshll.u32 %s3131_s0, 1  ;;  %vm2439_vm9 = vcmask 1046534   ;;  %vm2441_vm10 = vcmask 1047559  }
  0x1d   : > { %s4446_s21 = smov (!%p212_p8, %s2539_s21), 127  ;;  %p4223_p11 = scmp.lt.s32.totalorder %s2543_s10, 15 }
  0x1e   : > { %s2835_s22 = smul.u32 12, %s4446_s21 }
  0x1f   : > { %s4452_s10 = smov (!%p4223_p11, %s2543_s10), 15 }
  0x20   : > { %s3139_s25 = scalar_lea.vmem %s4287_s1, %s2835_s22  ;;  %p219_p9 = scmp.lt.s32.totalorder %s218_s26, 7 }
  0x21   : > { %v2847_v0 = vld [vmem:[%s3139_s25 + $0x8] ss:$0 sps:$4 sm:$0xff]   ;;  %v2848_v1 = vld [vmem:[%s3139_s25 + $0x14] ss:$0 sps:$4 sm:$0xff]   ;;  %v2849_v3 = vld [vmem:[%s3139_s25] sm:$0xff]   ;;  %p226_p10 = scmp.lt.s32.totalorder %s225_s27, 7 }
  0x22   : > { %2803 = vmatprep.subr.msk.bf16.mxu0 %vm295_vm0, %v2847_v0  ;;  %v300_v2 = vsel %vm295_vm0, %v2847_v0, 0  ;;  %2805 = vmatprep.subr.msk.bf16.mxu1 %vm295_vm0, %v2848_v1  ;;  %v362_v4 = vsel %vm295_vm0, %v2848_v1, 0  ;;  %v2850_v5 = vld [vmem:[%s3139_s25 + $0xc] sm:$0xff]   ;;  %v2851_v6 = vld [vmem:[%s3139_s25 + $0x20] ss:$0 sps:$4 sm:$0xff]   ;;  %v297_v7 = vsel %vm295_vm0, %v2849_v3, 0 }
  0x23   : > { %2676 = vmatpush3.bf16.xpose.msra.mxu0 %v300_v2  ;;  %2684 = vmatpush3.bf16.xpose.msra.mxu1 %v362_v4  ;;  %v2852_v8 = vld [vmem:[%s3139_s25 + $0x2c] ss:$0 sps:$4 sm:$0xff]   ;;  %v359_v9 = vsel %vm295_vm0, %v2850_v5, 0  ;;  %v424_v10 = vsel %vm295_vm0, %v2851_v6, 0  ;;  %v2853_v11 = vld [vmem:[%s3139_s25 + $0x18] sm:$0xff]   ;;  %v2854_v13 = vld [vmem:[%s3139_s25 + $0x24] sm:$0xff]  }
  0x24   : > { %2804 = vmatprep.subr.msk.bf16.mxu0 %vm295_vm0, %v2849_v3  ;;  %2806 = vmatprep.subr.msk.bf16.mxu1 %vm295_vm0, %v2850_v5  ;;  %v486_v12 = vsel %vm295_vm0, %v2852_v8, 0  ;;  %v421_v14 = vsel %vm295_vm0, %v2853_v11, 0  ;;  %v2856_v15 = vld [vmem:[%s3139_s25 + $0x38] ss:$0 sps:$4 sm:$0xff]   ;;  %v483_v16 = vsel %vm295_vm0, %v2854_v13, 0  ;;  %v2858_v19 = vld [vmem:[%s3139_s25 + $0x30] sm:$0xff]  }
  0x25   : > { %2679 = vmatprep.mubr.msk.bf16.mxu0 %vm295_vm0, %v2849_v3  ;;  %2687 = vmatprep.mubr.msk.bf16.mxu1 %vm295_vm0, %v2850_v5  ;;  %v2855_v17 = vld [vmem:[%s3139_s25 + $0x44] ss:$0 sps:$4 sm:$0xff]   ;;  %v548_v18 = vsel %vm295_vm0, %v2856_v15, 0  ;;  %v2857_v21 = vld [vmem:[%s3139_s25 + $0x3c] sm:$0xff]   ;;  %v545_v22 = vsel %vm295_vm0, %v2858_v19, 0  ;;  %v2862_v27 = vld [vmem:[%s3139_s25 + $0x48] sm:$0xff]  }
  0x26   : > { %v610_v20 = vsel %vm295_vm0, %v2855_v17, 0  ;;  %v2860_v23 = vld [vmem:[%s3139_s25 + $0x50] ss:$0 sps:$4 sm:$0xff]   ;;  %v607_v24 = vsel %vm295_vm0, %v2857_v21, 0  ;;  %v2859_v25 = vld [vmem:[%s3139_s25 + $0x5c] ss:$0 sps:$4 sm:$0xff]  }
  0x27   : > { %v672_v26 = vsel %vm295_vm0, %v2860_v23, 0  ;;  %v734_v28 = vsel %vm295_vm0, %v2859_v25, 0  ;;  %v2861_v29 = vld [vmem:[%s3139_s25 + $0x54] sm:$0xff]   ;;  %v669_v30 = vsel %vm295_vm0, %v2862_v27, 0  ;;  %v2865_v31 = vld [vmem:[%s3139_s25 + $0x68] ss:$0 sps:$4 sm:$0xff]  }
  0x28   : > { %v731_v32 = vsel %vm295_vm0, %v2861_v29, 0  ;;  %v2863_v33 = vld [vmem:[%s3139_s25 + $0x74] ss:$0 sps:$4 sm:$0xff]   ;;  %v796_v34 = vsel %vm295_vm0, %v2865_v31, 0  ;;  %v2864_v36 = vld [vmem:[%s3139_s25 + $0x6c] sm:$0xff]   ;;  %v2866_v37 = vld [vmem:[%s3139_s25 + $0x60] sm:$0xff]  }
  0x29   : > { %v858_v35 = vsel %vm295_vm0, %v2863_v33, 0  ;;  %v793_v38 = vsel %vm295_vm0, %v2866_v37, 0  ;;  %v2868_v39 = vld [vmem:[%s3139_s25 + $0x80] ss:$0 sps:$4 sm:$0xff]   ;;  %v855_v40 = vsel %vm295_vm0, %v2864_v36, 0  ;;  %v2870_v43 = vld [vmem:[%s3139_s25 + $0x78] sm:$0xff]  }
  0x2a   : > { %v2867_v41 = vld [vmem:[%s3139_s25 + $0x8c] ss:$0 sps:$4 sm:$0xff]   ;;  %v920_v42 = vsel %vm295_vm0, %v2868_v39, 0  ;;  %v2869_v45 = vld [vmem:[%s3139_s25 + $0x84] sm:$0xff]   ;;  %v917_v46 = vsel %vm295_vm0, %v2870_v43, 0  ;;  %v2874_v51 = vld [vmem:[%s3139_s25 + $0x90] sm:$0xff]  }
  0x2b   : > { %2678 = vmatpush3.bf16.xpose.msra.mxu0 %v297_v7  ;;  %2686 = vmatpush3.bf16.xpose.msra.mxu1 %v359_v9  ;;  %v982_v44 = vsel %vm295_vm0, %v2867_v41, 0  ;;  %v2872_v47 = vld [vmem:[%s3139_s25 + $0x98] ss:$0 sps:$4 sm:$0xff]   ;;  %v979_v48 = vsel %vm295_vm0, %v2869_v45, 0  ;;  %v2871_v49 = vld [vmem:[%s3139_s25 + $0xa4] ss:$0 sps:$4 sm:$0xff]  }
  0x2c   : > { %2807 = vmatprep.subr.msk.bf16.mxu0 %vm295_vm0, %v2851_v6  ;;  %2809 = vmatprep.subr.msk.bf16.mxu1 %vm295_vm0, %v2852_v8  ;;  %v1044_v50 = vsel %vm295_vm0, %v2872_v47, 0  ;;  %v1106_v52 = vsel %vm295_vm0, %v2871_v49, 0  ;;  %v2873_v53 = vld [vmem:[%s3139_s25 + $0x9c] sm:$0xff]   ;;  %v1041_v54 = vsel %vm295_vm0, %v2874_v51, 0  ;;  %v2875_v55 = vld [vmem:[%s3139_s25 + $0xb0] ss:$0 sps:$4 sm:$0xff]  }
  0x2d   : > { %v1103_v56 = vsel %vm295_vm0, %v2873_v53, 0  ;;  %v2876_v57 = vld [vmem:[%s3139_s25 + $0xbc] ss:$0 sps:$4 sm:$0xff]   ;;  %v1168_v58 = vsel %vm295_vm0, %v2875_v55, 0  ;;  %v2877_v59 = vld [vmem:[%s3139_s25 + $0xa8] sm:$0xff]   ;;  %v2878_v61 = vld [vmem:[%s3139_s25 + $0xb4] sm:$0xff]  }
  0x2e   : > { %v1230_v60 = vsel %vm295_vm0, %v2876_v57, 0  ;;  %v1165_v62 = vsel %vm295_vm0, %v2877_v59, 0  ;;  %v1227_v63 = vsel %vm295_vm0, %v2878_v61, 0  ;;  %s4448_s26 = smov (!%p219_p9, %s218_s26), 7  ;;  %s4450_s27 = smov (!%p226_p10, %s225_s27), 7 }
  0x2f   : > { %s2836_s28 = smul.u32 24, %s4448_s26  ;;  %s2544_s12 = sshll.u32 %s4452_s10, 3 }
  0x30   : > { %s2837_s29 = smul.u32 24, %s4450_s27  ;;  %s236_s15 = scalar_lea.vmem %s4290_s4, %s2544_s12 }
  0x31   : > { %s223_s6 = scalar_lea.vmem %s4288_s2, %s2836_s28 }
  0x32   : > { %2680 = vmatmul.mubr.msk.bf16.vlgmr.msra.gmra.mxu0 %vm295_vm0, %v2847_v0  ;;  %2688 = vmatmul.mubr.msk.bf16.vlgmr.msra.gmra.mxu1 %vm295_vm0, %v2848_v1  ;;  %s3277_s9 = scalar_lea.vmem %s4289_s3, %s2837_s29  ;;  %v3279_v0 = vld [vmem:[%s223_s6 + $0x10] sm:$0xff]  ;;  %v3284_v3 = vld [vmem:[%s223_s6] sm:$0xff] }
  0x33   : > { %2692 = vmatpush3.bf16.xpose.msra.mxu0 %v424_v10  ;;  %2700 = vmatpush3.bf16.xpose.msra.mxu1 %v486_v12  ;;  %v3282_v1 = vld [vmem:[%s3277_s9 + $0x10] sm:$0xff] }
  0x34   : > { %2808 = vmatprep.subr.msk.bf16.mxu0 %vm295_vm0, %v2853_v11  ;;  %2810 = vmatprep.subr.msk.bf16.mxu1 %vm295_vm0, %v2854_v13 }
  0x35   : > { %2695 = vmatprep.mubr.msk.bf16.mxu0 %vm295_vm0, %v2853_v11  ;;  %2703 = vmatprep.mubr.msk.bf16.mxu1 %vm295_vm0, %v2854_v13  ;;  %v3300_v13 = vld [vmem:[%s3277_s9] sm:$0xff] }
  0x3b   : > { %2694 = vmatpush3.bf16.xpose.msra.mxu0 %v421_v14  ;;  %2702 = vmatpush3.bf16.xpose.msra.mxu1 %v483_v16 }
  0x3c   : > { %2811 = vmatprep.subr.msk.bf16.mxu0 %vm295_vm0, %v2856_v15  ;;  %2813 = vmatprep.subr.msk.bf16.mxu1 %vm295_vm0, %v2855_v17 }
  0x42   : > { %2696 = vmatmul.mubr.msk.bf16.vlgmr.msra.gmra.mxu0 %vm295_vm0, %v2851_v6  ;;  %2704 = vmatmul.mubr.msk.bf16.vlgmr.msra.gmra.mxu1 %vm295_vm0, %v2852_v8 }
  0x43   : > { %2708 = vmatpush3.bf16.xpose.msra.mxu0 %v548_v18  ;;  %2716 = vmatpush3.bf16.xpose.msra.mxu1 %v610_v20 }
  0x44   : > { %2812 = vmatprep.subr.msk.bf16.mxu0 %vm295_vm0, %v2858_v19  ;;  %2814 = vmatprep.subr.msk.bf16.mxu1 %vm295_vm0, %v2857_v21 }
  0x45   : > { %2719 = vmatprep.mubr.msk.bf16.mxu1 %vm295_vm0, %v2857_v21  ;;  %2711 = vmatprep.mubr.msk.bf16.mxu0 %vm295_vm0, %v2858_v19  ;;  %v3308_v21 = vld [vmem:[%s223_s6 + $0x8] sm:$0xff] }
  0x4b   : > { %2710 = vmatpush3.bf16.xpose.msra.mxu0 %v545_v22  ;;  %2718 = vmatpush3.bf16.xpose.msra.mxu1 %v607_v24 }
  0x4c   : > { %2815 = vmatprep.subr.msk.bf16.mxu0 %vm295_vm0, %v2860_v23  ;;  %2817 = vmatprep.subr.msk.bf16.mxu1 %vm295_vm0, %v2859_v25 }
  0x52   : > { %2712 = vmatmul.mubr.msk.bf16.vlgmr.msra.gmra.mxu0 %vm295_vm0, %v2856_v15  ;;  %2720 = vmatmul.mubr.msk.bf16.vlgmr.msra.gmra.mxu1 %vm295_vm0, %v2855_v17 }
  0x53   : > { %2724 = vmatpush3.bf16.xpose.msra.mxu0 %v672_v26  ;;  %2732 = vmatpush3.bf16.xpose.msra.mxu1 %v734_v28 }
  0x54   : > { %2816 = vmatprep.subr.msk.bf16.mxu0 %vm295_vm0, %v2862_v27  ;;  %2818 = vmatprep.subr.msk.bf16.mxu1 %vm295_vm0, %v2861_v29 }
  0x55   : > { %2735 = vmatprep.mubr.msk.bf16.mxu1 %vm295_vm0, %v2861_v29  ;;  %2727 = vmatprep.mubr.msk.bf16.mxu0 %vm295_vm0, %v2862_v27 }
  0x5b   : > { %2726 = vmatpush3.bf16.xpose.msra.mxu0 %v669_v30  ;;  %2734 = vmatpush3.bf16.xpose.msra.mxu1 %v731_v32 }
  0x5c   : > { %2819 = vmatprep.subr.msk.bf16.mxu0 %vm295_vm0, %v2865_v31  ;;  %2821 = vmatprep.subr.msk.bf16.mxu1 %vm295_vm0, %v2863_v33 }
  0x62   : > { %2728 = vmatmul.mubr.msk.bf16.vlgmr.msra.gmra.mxu0 %vm295_vm0, %v2860_v23  ;;  %2736 = vmatmul.mubr.msk.bf16.vlgmr.msra.gmra.mxu1 %vm295_vm0, %v2859_v25 }
  0x63   : > { %2740 = vmatpush3.bf16.xpose.msra.mxu0 %v796_v34  ;;  %2748 = vmatpush3.bf16.xpose.msra.mxu1 %v858_v35 }
  0x64   : > { %2751 = vmatprep.mubr.msk.bf16.mxu1 %vm295_vm0, %v2864_v36  ;;  %2822 = vmatprep.subr.msk.bf16.mxu1 %vm295_vm0, %v2864_v36 }
  0x65   : > { %2820 = vmatprep.subr.msk.bf16.mxu0 %vm295_vm0, %v2866_v37  ;;  %2743 = vmatprep.mubr.msk.bf16.mxu0 %vm295_vm0, %v2866_v37 }
  0x6b   : > { %2742 = vmatpush3.bf16.xpose.msra.mxu0 %v793_v38  ;;  %2750 = vmatpush3.bf16.xpose.msra.mxu1 %v855_v40 }
  0x6c   : > { %2823 = vmatprep.subr.msk.bf16.mxu0 %vm295_vm0, %v2868_v39  ;;  %2825 = vmatprep.subr.msk.bf16.mxu1 %vm295_vm0, %v2867_v41 }
  0x72   : > { %2744 = vmatmul.mubr.msk.bf16.vlgmr.msra.gmra.mxu0 %vm295_vm0, %v2865_v31  ;;  %2752 = vmatmul.mubr.msk.bf16.vlgmr.msra.gmra.mxu1 %vm295_vm0, %v2863_v33  ;;  %v3327_v31 = vld [vmem:[%s3277_s9 + $0x8] sm:$0xff] }
  0x73   : > { %2756 = vmatpush3.bf16.xpose.msra.mxu0 %v920_v42  ;;  %2764 = vmatpush3.bf16.xpose.msra.mxu1 %v982_v44 }
  0x74   : > { %2824 = vmatprep.subr.msk.bf16.mxu0 %vm295_vm0, %v2870_v43  ;;  %2826 = vmatprep.subr.msk.bf16.mxu1 %vm295_vm0, %v2869_v45 }
  0x75   : > { %2767 = vmatprep.mubr.msk.bf16.mxu1 %vm295_vm0, %v2869_v45  ;;  %2759 = vmatprep.mubr.msk.bf16.mxu0 %vm295_vm0, %v2870_v43 }
  0x7b   : > { %2758 = vmatpush3.bf16.xpose.msra.mxu0 %v917_v46  ;;  %2766 = vmatpush3.bf16.xpose.msra.mxu1 %v979_v48 }
  0x7c   : > { %2827 = vmatprep.subr.msk.bf16.mxu0 %vm295_vm0, %v2872_v47  ;;  %2829 = vmatprep.subr.msk.bf16.mxu1 %vm295_vm0, %v2871_v49 }
  0x82   : > { %2760 = vmatmul.mubr.msk.bf16.vlgmr.msra.gmra.mxu0 %vm295_vm0, %v2868_v39  ;;  %2768 = vmatmul.mubr.msk.bf16.vlgmr.msra.gmra.mxu1 %vm295_vm0, %v2867_v41 }
  0x83   : > { %2772 = vmatpush3.bf16.xpose.msra.mxu0 %v1044_v50  ;;  %2780 = vmatpush3.bf16.xpose.msra.mxu1 %v1106_v52 }
  0x84   : > { %2828 = vmatprep.subr.msk.bf16.mxu0 %vm295_vm0, %v2874_v51  ;;  %2830 = vmatprep.subr.msk.bf16.mxu1 %vm295_vm0, %v2873_v53 }
  0x85   : > { %2783 = vmatprep.mubr.msk.bf16.mxu1 %vm295_vm0, %v2873_v53  ;;  %2775 = vmatprep.mubr.msk.bf16.mxu0 %vm295_vm0, %v2874_v51 }
  0x8b   : > { %2774 = vmatpush3.bf16.xpose.msra.mxu0 %v1041_v54  ;;  %2782 = vmatpush3.bf16.xpose.msra.mxu1 %v1103_v56 }
  0x8c   : > { %2831 = vmatprep.subr.msk.bf16.mxu0 %vm295_vm0, %v2875_v55  ;;  %2833 = vmatprep.subr.msk.bf16.mxu1 %vm295_vm0, %v2876_v57 }
  0x92   : > { %2776 = vmatmul.mubr.msk.bf16.vlgmr.msra.gmra.mxu0 %vm295_vm0, %v2872_v47  ;;  %2784 = vmatmul.mubr.msk.bf16.vlgmr.msra.gmra.mxu1 %vm295_vm0, %v2871_v49 }
  0x93   : > { %2788 = vmatpush3.bf16.xpose.msra.mxu0 %v1168_v58  ;;  %2796 = vmatpush3.bf16.xpose.msra.mxu1 %v1230_v60 }
  0x94   : > { %2832 = vmatprep.subr.msk.bf16.mxu0 %vm295_vm0, %v2877_v59  ;;  %2834 = vmatprep.subr.msk.bf16.mxu1 %vm295_vm0, %v2878_v61 }
  0x95   : > { %2791 = vmatprep.mubr.msk.bf16.mxu0 %vm295_vm0, %v2877_v59  ;;  %2799 = vmatprep.mubr.msk.bf16.mxu1 %vm295_vm0, %v2878_v61 }
  0x9b   : > { %2790 = vmatpush3.bf16.xpose.msra.mxu0 %v1165_v62  ;;  %2798 = vmatpush3.bf16.xpose.msra.mxu1 %v1227_v63 }
  0xa2   : > { %2792 = vmatmul.mubr.msk.bf16.vlgmr.msra.gmra.mxu0 %vm295_vm0, %v2875_v55  ;;  %2800 = vmatmul.mubr.msk.bf16.vlgmr.msra.gmra.mxu1 %vm295_vm0, %v2876_v57 }
  0xf2   : > { %v2681_v2 = vpop.f32.mrf.mxu0  ;;  %v2689_v4 = vpop.f32.mrf.mxu1 }
  0xf3   : > { %v1913_v5 = vmul.f32 %v2681_v2, %v3282_v1  ;;  %v3288_v6 = vadd.f32 %v2681_v2, %v3279_v0  ;;  %v3291_v7 = vadd.f32 %v2689_v4, %v3279_v0  ;;  %v1916_v17 = vmul.f32 %v2689_v4, %v3282_v1 }
  0xf4   : > { %v336_v8 = vpop.f32.mrf.mxu0  ;;  %v398_v10 = vpop.f32.mrf.mxu1 }
  0xf5   : > { %v3294_v9 = vadd.f32 %v3284_v3, %v336_v8  ;;  %v1965_v11 = vsel %vm1331_vm1, %v1913_v5, 0.0  ;;  %v1338_v12 = vsel %vm1331_vm1, %v3288_v6, -inf  ;;  %v1347_v16 = vsel %vm1331_vm1, %v3291_v7, -inf }
  0xf6   : > { %1966 = vadd.xlane.f32.xlu0 %v1965_v11  ;;  %1339 = vmax.xlane.f32.xlu1 %v1338_v12  ;;  %v2682_v14 = vpop.f32.mrf.mxu0  ;;  %v2690_v15 = vpop.f32.mrf.mxu1  ;;  %v1911_v18 = vmul.f32 %v3300_v13, %v336_v8  ;;  %v3311_v22 = vadd.f32 %v3284_v3, %v398_v10  ;;  %v1974_v24 = vsel %vm1331_vm1, %v1916_v17, 0.0  ;;  %v1914_v27 = vmul.f32 %v3300_v13, %v398_v10 }
  0xf7   : > { %v1332_v19 = vsel %vm1331_vm1, %v3294_v9, -inf }
  0xf8   : > { %v339_v20 = vpop.f32.mrf.mxu0  ;;  %v1959_v25 = vsel %vm1331_vm1, %v1911_v18, 0.0  ;;  %v401_v26 = vpop.f32.mrf.mxu1  ;;  %v1341_v29 = vsel %vm1331_vm1, %v3311_v22, -inf  ;;  %v1968_v38 = vsel %vm1331_vm1, %v1914_v27, 0.0 }
  0xf9   : > { %v3314_v23 = vadd.f32 %v3308_v21, %v339_v20  ;;  %v3320_v28 = vadd.f32 %v3308_v21, %v401_v26  ;;  %v1912_v35 = vmul.f32 %v3327_v31, %v339_v20  ;;  %v1915_v36 = vmul.f32 %v3327_v31, %v401_v26 }
  0xfa   : > { %1348 = vmax.xlane.f32.xlu1 %v1347_v16  ;;  %1333 = vmax.xlane.f32.xlu0 %v1332_v19 }
  0xfb   : > { %v1335_v30 = vsel %vm1331_vm1, %v3314_v23, -inf  ;;  %v1344_v39 = vsel %vm1331_vm1, %v3320_v28, -inf  ;;  %v1962_v44 = vsel %vm1331_vm1, %v1912_v35, 0.0  ;;  %v1971_v45 = vsel %vm1331_vm1, %v1915_v36, 0.0 }
  0xfe   : > { %1975 = vadd.xlane.f32.xlu1 %v1974_v24  ;;  %1960 = vadd.xlane.f32.xlu0 %v1959_v25 }
 0x102   : > { %1342 = vmax.xlane.f32.xlu1 %v1341_v29  ;;  %1336 = vmax.xlane.f32.xlu0 %v1335_v30  ;;  %v2697_v32 = vpop.f32.mrf.mxu0  ;;  %v2705_v33 = vpop.f32.mrf.mxu1 }
 0x103   : > { %v3335_v41 = vadd.f32 %v2697_v32, %v3279_v0  ;;  %v3338_v42 = vadd.f32 %v2705_v33, %v3279_v0  ;;  %v1919_v48 = vmul.f32 %v2697_v32, %v3282_v1  ;;  %v1922_v51 = vmul.f32 %v2705_v33, %v3282_v1 }
 0x104   : > { %v460_v34 = vpop.f32.mrf.mxu0  ;;  %v522_v37 = vpop.f32.mrf.mxu1 }
 0x105   : > { %v1365_v46 = vsel %vm1331_vm1, %v3338_v42, -inf  ;;  %v1356_v47 = vsel %vm1331_vm1, %v3335_v41, -inf  ;;  %v3348_v49 = vadd.f32 %v3284_v3, %v522_v37  ;;  %v1920_v52 = vmul.f32 %v3300_v13, %v522_v37 }
 0x106   : > { %1969 = vadd.xlane.f32.xlu1 %v1968_v38  ;;  %1345 = vmax.xlane.f32.xlu0 %v1344_v39  ;;  %v2698_v40 = vpop.f32.mrf.mxu0  ;;  %v2706_v43 = vpop.f32.mrf.mxu1  ;;  %v1983_v55 = vsel %vm1331_vm1, %v1919_v48, 0.0  ;;  %v3356_v59 = vadd.f32 %v3284_v3, %v460_v34  ;;  %v1992_v62 = vsel %vm1331_vm1, %v1922_v51, 0.0  ;;  %v1917_v5 = vmul.f32 %v3300_v13, %v460_v34 }
 0x107   : > { %v1359_v54 = vsel %vm1331_vm1, %v3348_v49, -inf  ;;  %v1986_v61 = vsel %vm1331_vm1, %v1920_v52, 0.0 }
 0x108   : > { %v463_v50 = vpop.f32.mrf.mxu0  ;;  %v525_v53 = vpop.f32.mrf.mxu1  ;;  %v1350_v10 = vsel %vm1331_vm1, %v3356_v59, -inf  ;;  %v1977_v15 = vsel %vm1331_vm1, %v1917_v5, 0.0 }
 0x109   : > { %v3359_v60 = vadd.f32 %v3308_v21, %v463_v50  ;;  %v1918_v8 = vmul.f32 %v3327_v31, %v463_v50  ;;  %v3373_v14 = vadd.f32 %v3308_v21, %v525_v53  ;;  %v1921_v19 = vmul.f32 %v3327_v31, %v525_v53 }
 0x10a   : > { %1963 = vadd.xlane.f32.xlu1 %v1962_v44  ;;  %1972 = vadd.xlane.f32.xlu0 %v1971_v45 }
 0x10b   : > { %v1353_v11 = vsel %vm1331_vm1, %v3359_v60, -inf  ;;  %v1980_v16 = vsel %vm1331_vm1, %v1918_v8, 0.0  ;;  %v1362_v25 = vsel %vm1331_vm1, %v3373_v14, -inf  ;;  %v1989_v33 = vsel %vm1331_vm1, %v1921_v19, 0.0 }
 0x10e   : > { %1366 = vmax.xlane.f32.xlu1 %v1365_v46  ;;  %1357 = vmax.xlane.f32.xlu0 %v1356_v47 }
 0x112   : > { %1360 = vmax.xlane.f32.xlu1 %v1359_v54  ;;  %1984 = vadd.xlane.f32.xlu0 %v1983_v55  ;;  %v2713_v56 = vpop.f32.mrf.mxu0  ;;  %v2721_v57 = vpop.f32.mrf.mxu1 }
 0x113   : > { %v3370_v12 = vadd.f32 %v2721_v57, %v3279_v0  ;;  %v3392_v30 = vadd.f32 %v2713_v56, %v3279_v0  ;;  %v1925_v39 = vmul.f32 %v2713_v56, %v3282_v1  ;;  %v1928_v44 = vmul.f32 %v2721_v57, %v3282_v1 }
 0x114   : > { %v584_v58 = vpop.f32.mrf.mxu0  ;;  %v646_v63 = vpop.f32.mrf.mxu1 }
 0x115   : > { %v1383_v17 = vsel %vm1331_vm1, %v3370_v12, -inf  ;;  %v3381_v20 = vadd.f32 %v3284_v3, %v646_v63  ;;  %v1923_v32 = vmul.f32 %v3300_v13, %v584_v58  ;;  %v1926_v38 = vmul.f32 %v3300_v13, %v646_v63 }
 0x116   : > { %1987 = vadd.xlane.f32.xlu1 %v1986_v61  ;;  %1993 = vadd.xlane.f32.xlu0 %v1992_v62  ;;  %v2714_v2 = vpop.f32.mrf.mxu0  ;;  %v2722_v4 = vpop.f32.mrf.mxu1  ;;  %v1374_v40 = vsel %vm1331_vm1, %v3392_v30, -inf  ;;  %v2001_v46 = vsel %vm1331_vm1, %v1925_v39, 0.0  ;;  %v3416_v51 = vadd.f32 %v3284_v3, %v584_v58  ;;  %v2010_v53 = vsel %vm1331_vm1, %v1928_v44, 0.0 }
 0x117   : > { %v1377_v34 = vsel %vm1331_vm1, %v3381_v20, -inf  ;;  %v1995_v43 = vsel %vm1331_vm1, %v1923_v32, 0.0  ;;  %v2004_v47 = vsel %vm1331_vm1, %v1926_v38, 0.0 }
 0x118   : > { %v587_v18 = vpop.f32.mrf.mxu0  ;;  %v649_v24 = vpop.f32.mrf.mxu1  ;;  %v1368_v63 = vsel %vm1331_vm1, %v3416_v51, -inf }
 0x119   : > { %v3407_v45 = vadd.f32 %v3308_v21, %v587_v18  ;;  %v3430_v58 = vadd.f32 %v3308_v21, %v649_v24  ;;  %v1924_v8 = vmul.f32 %v3327_v31, %v587_v18 }
 0x11a   : > { %1351 = vmax.xlane.f32.xlu0 %v1350_v10  ;;  %1354 = vmax.xlane.f32.xlu1 %v1353_v11 }
 0x11b   : > { %v1371_v54 = vsel %vm1331_vm1, %v3407_v45, -inf  ;;  %v1380_v11 = vsel %vm1331_vm1, %v3430_v58, -inf  ;;  %v1998_v19 = vsel %vm1331_vm1, %v1924_v8, 0.0 }
 0x11e   : > { %1978 = vadd.xlane.f32.xlu0 %v1977_v15  ;;  %1981 = vadd.xlane.f32.xlu1 %v1980_v16  ;;  %v1927_v16 = vmul.f32 %v3327_v31, %v649_v24 }
 0x120   : > { %v2007_v24 = vsel %vm1331_vm1, %v1927_v16, 0.0 }
 0x122   : > { %1363 = vmax.xlane.f32.xlu0 %v1362_v25  ;;  %1384 = vmax.xlane.f32.xlu1 %v1383_v17  ;;  %v3385_v26 = vpop.f32.mrf.mxu0  ;;  %v3387_v27 = vpop.f32.mrf.mxu1 }
 0x123   : > { %4324 = vst [vmem:[#allocation5_spill] sm:$0xff] %v3385_v26  ;;  %4325 = vst [vmem:[#allocation6_spill] sm:$0xff] %v3387_v27  ;;  %v3413_v48 = vadd.f32 %v3387_v27, %v3279_v0 }
 0x124   : > { %v3389_v29 = vpop.f32.mrf.mxu0  ;;  %v3398_v35 = vpop.f32.mrf.mxu1 }
 0x125   : > { %4326 = vst [vmem:[#allocation7_spill] sm:$0xff] %v3398_v35  ;;  %v1401_v56 = vsel %vm1331_vm1, %v3413_v48, -inf  ;;  %v3434_v62 = vadd.f32 %v3284_v3, %v3398_v35  ;;  %v1929_v10 = vmul.f32 %v3300_v13, %v3389_v29 }
 0x126   : > { %1990 = vadd.xlane.f32.xlu0 %v1989_v33  ;;  %1378 = vmax.xlane.f32.xlu1 %v1377_v34  ;;  %v2730_v36 = vpop.f32.mrf.mxu0  ;;  %v2738_v37 = vpop.f32.mrf.mxu1  ;;  %v3458_v33 = vadd.f32 %v3385_v26, %v3279_v0 }
 0x127   : > { %v1395_v15 = vsel %vm1331_vm1, %v3434_v62, -inf  ;;  %v2013_v18 = vsel %vm1331_vm1, %v1929_v10, 0.0 }
 0x128   : > { %v711_v50 = vpop.f32.mrf.mxu0  ;;  %v3418_v52 = vpop.f32.mrf.mxu1 }
 0x129   : > { %4327 = vst [vmem:[#allocation8_spill] sm:$0xff] %v3418_v52  ;;  %v3447_v17 = vadd.f32 %v3308_v21, %v711_v50 }
 0x12a   : > { %1375 = vmax.xlane.f32.xlu0 %v1374_v40  ;;  %1996 = vadd.xlane.f32.xlu1 %v1995_v43  ;;  %v3473_v43 = vadd.f32 %v3284_v3, %v3389_v29 }
 0x12b   : > { %v1389_v36 = vsel %vm1331_vm1, %v3447_v17, -inf }
 0x12c   : > { %v1386_v29 = vsel %vm1331_vm1, %v3473_v43, -inf }
 0x12e   : > { %2002 = vadd.xlane.f32.xlu0 %v2001_v46  ;;  %2005 = vadd.xlane.f32.xlu1 %v2004_v47  ;;  %v1392_v46 = vsel %vm1331_vm1, %v3458_v33, -inf }
 0x132   : > { %2011 = vadd.xlane.f32.xlu0 %v2010_v53  ;;  %1372 = vmax.xlane.f32.xlu1 %v1371_v54  ;;  %v3423_v55 = vpop.f32.mrf.mxu0  ;;  %v2753_v57 = vpop.f32.mrf.mxu1 }
 0x133   : > { %v3452_v25 = vadd.f32 %v2753_v57, %v3279_v0  ;;  %v1940_v44 = vmul.f32 %v2753_v57, %v3282_v1  ;;  %v3500_v16 = vadd.f32 %v3423_v55, %v3279_v0 }
 0x134   : > { %v3427_v61 = vpop.f32.mrf.mxu0  ;;  %v894_v2 = vpop.f32.mrf.mxu1 }
 0x135   : > { %v1419_v38 = vsel %vm1331_vm1, %v3452_v25, -inf  ;;  %v2046_v57 = vsel %vm1331_vm1, %v1940_v44, 0.0 }
 0x136   : > { %1369 = vmax.xlane.f32.xlu0 %v1368_v63  ;;  %1402 = vmax.xlane.f32.xlu1 %v1401_v56  ;;  %v2746_v4 = vpop.f32.mrf.mxu0  ;;  %v2754_v5 = vpop.f32.mrf.mxu1  ;;  %v3482_v56 = vadd.f32 %v3308_v21, %v3418_v52  ;;  %v3485_v63 = vadd.f32 %v3284_v3, %v894_v2 }
 0x137   : > { %v1930_v4 = vmul.f32 %v3327_v31, %v711_v50  ;;  %v1935_v5 = vmul.f32 %v3300_v13, %v3427_v61 }
 0x138   : > { %v3454_v32 = vpop.f32.mrf.mxu0  ;;  %v3460_v34 = vpop.f32.mrf.mxu1  ;;  %v1398_v8 = vsel %vm1331_vm1, %v3482_v56, -inf  ;;  %v1413_v10 = vsel %vm1331_vm1, %v3485_v63, -inf }
 0x139   : > { %v2016_v50 = vsel %vm1331_vm1, %v1930_v4, 0.0  ;;  %v3516_v44 = vadd.f32 %v3308_v21, %v3454_v32 }
 0x13a   : > { %1381 = vmax.xlane.f32.xlu0 %v1380_v11  ;;  %1396 = vmax.xlane.f32.xlu1 %v1395_v15  ;;  %v1938_v15 = vmul.f32 %v3300_v13, %v894_v2  ;;  %v1937_v2 = vmul.f32 %v3423_v55, %v3282_v1  ;;  %v3528_v55 = vadd.f32 %v3284_v3, %v3427_v61 }
 0x13c   : > { %v1404_v61 = vsel %vm1331_vm1, %v3528_v55, -inf }
 0x13e   : > { %1999 = vadd.xlane.f32.xlu0 %v1998_v19  ;;  %2014 = vadd.xlane.f32.xlu1 %v2013_v18  ;;  %v2031_v19 = vsel %vm1331_vm1, %v1935_v5, 0.0  ;;  %v2037_v5 = vsel %vm1331_vm1, %v1937_v2, 0.0 }
 0x142   : > { %2008 = vadd.xlane.f32.xlu0 %v2007_v24  ;;  %1390 = vmax.xlane.f32.xlu1 %v1389_v36  ;;  %v3465_v37 = vpop.f32.mrf.mxu0  ;;  %v2769_v39 = vpop.f32.mrf.mxu1 }
 0x143   : > { %v3571_v35 = vadd.f32 %v3465_v37, %v3279_v0 }
 0x144   : > { %v3469_v40 = vpop.f32.mrf.mxu0  ;;  %v3478_v47 = vpop.f32.mrf.mxu1 }
 0x146   : > { %1393 = vmax.xlane.f32.xlu0 %v1392_v46  ;;  %1420 = vmax.xlane.f32.xlu1 %v1419_v38  ;;  %v2762_v53 = vpop.f32.mrf.mxu0  ;;  %v2770_v54 = vpop.f32.mrf.mxu1  ;;  %v1410_v46 = vsel %vm1331_vm1, %v3500_v16, -inf }
 0x147   : > { %v2040_v53 = vsel %vm1331_vm1, %v1938_v15, 0.0 }
 0x148   : > { %v959_v11 = vpop.f32.mrf.mxu0  ;;  %v3504_v18 = vpop.f32.mrf.mxu1 }
 0x14a   : > { %1387 = vmax.xlane.f32.xlu0 %v1386_v29  ;;  %2047 = vadd.xlane.f32.xlu1 %v2046_v57  ;;  %v3524_v57 = vadd.f32 %v2769_v39, %v3279_v0 }
 0x14c   : > { %v1437_v15 = vsel %vm1331_vm1, %v3524_v57, -inf }
 0x14e   : > { %1399 = vmax.xlane.f32.xlu0 %v1398_v8  ;;  %1414 = vmax.xlane.f32.xlu1 %v1413_v10  ;;  %v1407_v8 = vsel %vm1331_vm1, %v3516_v44, -inf  ;;  %v1943_v10 = vmul.f32 %v3465_v37, %v3282_v1  ;;  %v1428_v37 = vsel %vm1331_vm1, %v3571_v35, -inf }
 0x152   : > { %2017 = vadd.xlane.f32.xlu0 %v2016_v50  ;;  %2032 = vadd.xlane.f32.xlu1 %v2031_v19  ;;  %v3506_v24 = vpop.f32.mrf.mxu0  ;;  %v3508_v36 = vpop.f32.mrf.mxu1  ;;  %v3539_v50 = vadd.f32 %v3308_v21, %v3460_v34  ;;  %v2055_v19 = vsel %vm1331_vm1, %v1943_v10, 0.0  ;;  %v1939_v10 = vmul.f32 %v3327_v31, %v3460_v34  ;;  %v3574_v34 = vadd.f32 %v3308_v21, %v959_v11 }
 0x154   : > { %v3510_v38 = vpop.f32.mrf.mxu0  ;;  %v3521_v54 = vpop.f32.mrf.mxu1  ;;  %v2043_v27 = vsel %vm1331_vm1, %v1939_v10, 0.0  ;;  %v1945_v10 = vmul.f32 %v3327_v31, %v3504_v18 }
 0x156   : > { %1411 = vmax.xlane.f32.xlu0 %v1410_v46  ;;  %2041 = vadd.xlane.f32.xlu1 %v2040_v53  ;;  %v2778_v29 = vpop.f32.mrf.mxu0  ;;  %v2786_v4 = vpop.f32.mrf.mxu1  ;;  %v1936_v46 = vmul.f32 %v3327_v31, %v3454_v32  ;;  %v1946_v53 = vmul.f32 %v2769_v39, %v3282_v1  ;;  %v3563_v32 = vadd.f32 %v3284_v3, %v3478_v47 }
 0x157   : > { %v1416_v29 = vsel %vm1331_vm1, %v3539_v50, -inf }
 0x158   : > { %v3544_v2 = vpop.f32.mrf.mxu0  ;;  %v3551_v4 = vpop.f32.mrf.mxu1  ;;  %v2034_v39 = vsel %vm1331_vm1, %v1936_v46, 0.0  ;;  %v1431_v46 = vsel %vm1331_vm1, %v3563_v32, -inf }
 0x159   : > { %v1948_v26 = vmul.f32 %v3327_v31, %v3544_v2 }
 0x15a   : > { %2038 = vadd.xlane.f32.xlu0 %v2037_v5  ;;  %1408 = vmax.xlane.f32.xlu1 %v1407_v8 }
 0x15e   : > { %1405 = vmax.xlane.f32.xlu0 %v1404_v61  ;;  %1438 = vmax.xlane.f32.xlu1 %v1437_v15  ;;  %v2064_v61 = vsel %vm1331_vm1, %v1946_v53, 0.0  ;;  %v3581_v53 = vadd.f32 %v3284_v3, %v3469_v40 }
 0x162   : > { %1417 = vmax.xlane.f32.xlu0 %v1416_v29  ;;  %2056 = vadd.xlane.f32.xlu1 %v2055_v19  ;;  %v3553_v5 = vpop.f32.mrf.mxu0  ;;  %v3555_v8 = vpop.f32.mrf.mxu1 }
 0x163   : > { %4328 = vst [vmem:[#allocation9_spill] sm:$0xff] %v3555_v8 }
 0x164   : > { %v3557_v15 = vpop.f32.mrf.mxu0  ;;  %v3567_v52 = vpop.f32.mrf.mxu1 }
 0x166   : > { %2035 = vadd.xlane.f32.xlu0 %v2034_v39  ;;  %2065 = vadd.xlane.f32.xlu1 %v2064_v61  ;;  %v2794_v19 = vpop.f32.mrf.mxu0  ;;  %v2802_v29 = vpop.f32.mrf.mxu1  ;;  %v1942_v39 = vmul.f32 %v3327_v31, %v959_v11  ;;  %v1425_v61 = vsel %vm1331_vm1, %v3574_v34, -inf  ;;  %v3597_v11 = vadd.f32 %v3508_v36, %v3279_v0 }
 0x167   : > { %v1422_v19 = vsel %vm1331_vm1, %v3581_v53, -inf }
 0x168   : > { %v2052_v29 = vsel %vm1331_vm1, %v1942_v39, 0.0  ;;  %v1455_v39 = vsel %vm1331_vm1, %v3597_v11, -inf }
 0x16a   : > { %2044 = vadd.xlane.f32.xlu0 %v2043_v27  ;;  %1432 = vmax.xlane.f32.xlu1 %v1431_v46  ;;  %v1941_v27 = vmul.f32 %v3300_v13, %v3469_v40  ;;  %v1944_v46 = vmul.f32 %v3300_v13, %v3478_v47  ;;  %v1949_v40 = vmul.f32 %v3506_v24, %v3282_v1 }
 0x16c   : > { %v2073_v47 = vsel %vm1331_vm1, %v1949_v40, 0.0 }
 0x16e   : > { %1429 = vmax.xlane.f32.xlu0 %v1428_v37  ;;  %1426 = vmax.xlane.f32.xlu1 %v1425_v61  ;;  %v2049_v37 = vsel %vm1331_vm1, %v1941_v27, 0.0  ;;  %v2061_v61 = vsel %vm1331_vm1, %v1945_v10, 0.0  ;;  %v1952_v10 = vmul.f32 %v3508_v36, %v3282_v1  ;;  %v3617_v27 = vadd.f32 %v3506_v24, %v3279_v0 }
 0x16f   : > { %v3631_v1 = vadd.f32 %v3284_v3, %v3510_v38 }
 0x170   : > { %v2082_v24 = vsel %vm1331_vm1, %v1952_v10, 0.0  ;;  %v1446_v36 = vsel %vm1331_vm1, %v3617_v27, -inf }
 0x171   : > { %4331 = vst [vmem:[#allocation12_spill] sm:$0xff] %v3631_v1  ;;  %v1440_v10 = vsel %vm1331_vm1, %v3631_v1, -inf }
 0x172   : > { %1423 = vmax.xlane.f32.xlu0 %v1422_v19  ;;  %2053 = vadd.xlane.f32.xlu1 %v2052_v29  ;;  %v3609_v19 = vadd.f32 %v3308_v21, %v3504_v18  ;;  %v2058_v29 = vsel %vm1331_vm1, %v1944_v46, 0.0  ;;  %v3627_v46 = vadd.f32 %v3284_v3, %v3521_v54 }
 0x174   : > { %4330 = vst [vmem:[#allocation11_spill] sm:$0xff] %v3627_v46 }
 0x176   : > { %2050 = vadd.xlane.f32.xlu0 %v2049_v37  ;;  %2062 = vadd.xlane.f32.xlu1 %v2061_v61  ;;  %v1434_v37 = vsel %vm1331_vm1, %v3609_v19, -inf }
 0x17a   : > { %2059 = vadd.xlane.f32.xlu0 %v2058_v29  ;;  %1456 = vmax.xlane.f32.xlu1 %v1455_v39  ;;  %v1947_v29 = vmul.f32 %v3300_v13, %v3510_v38 }
 0x17c   : > { %v2067_v1 = vsel %vm1331_vm1, %v1947_v29, 0.0 }
 0x17e   : > { %1435 = vmax.xlane.f32.xlu0 %v1434_v37  ;;  %2074 = vadd.xlane.f32.xlu1 %v2073_v47  ;;  %v3644_v47 = vadd.f32 %v3308_v21, %v3544_v2  ;;  %v1449_v37 = vsel %vm1331_vm1, %v3627_v46, -inf  ;;  %v1951_v2 = vmul.f32 %v3327_v31, %v3551_v4 }
 0x17f   : > { %v3621_v18 = vpop.xlane.xlu0 %1966  ;;  %v3623_v61 = vpop.xlane.xlu1 %1339 }
 0x180   : > { %4329 = vst [vmem:[#allocation10_spill] sm:$0xff] %v3621_v18  ;;  %v1950_v18 = vmul.f32 %v3300_v13, %v3521_v54  ;;  %v1478_v38 = vsub.f32 %v3288_v6, %v3623_v61  ;;  %v3671_v6 = vadd.f32 %v3308_v21, %v3551_v4 }
 0x182   : > { %2083 = vadd.xlane.f32.xlu1 %v2082_v24  ;;  %1447 = vmax.xlane.f32.xlu0 %v1446_v36  ;;  %v1528_v13 = vmul.f32 1.442695, %v1478_v38 }
 0x183   : > { %v3636_v40 = vpop.xlane.xlu1 %1348  ;;  %v3638_v39 = vpop.xlane.xlu0 %1333 }
 0x184   : > { %v1481_v46 = vsub.f32 %v3291_v7, %v3636_v40  ;;  %v1476_v54 = vsub.f32 %v3294_v9, %v3638_v39  ;;  %v2076_v7 = vsel %vm1331_vm1, %v1950_v18, 0.0  ;;  %v3687_v9 = vadd.f32 %v3555_v8, %v3279_v0 }
 0x185   : > { %2879 = vpow2.f32 %v1528_v13 }
 0x186   : > { %1450 = vmax.xlane.f32.xlu1 %v1449_v37  ;;  %1441 = vmax.xlane.f32.xlu0 %v1440_v10  ;;  %v1443_v37 = vsel %vm1331_vm1, %v3644_v47, -inf  ;;  %v1534_v29 = vmul.f32 1.442695, %v1481_v46  ;;  %v1524_v31 = vmul.f32 1.442695, %v1476_v54  ;;  %v1473_v13 = vsel %vm1331_vm1, %v3687_v9, -inf }
 0x187   : > { %v3650_v24 = vpop.xlane.xlu1 %1975  ;;  %v3652_v36 = vpop.xlane.xlu0 %1960 }
 0x188   : > { %4332 = vst [vmem:[#allocation13_spill] sm:$0xff] %v3650_v24  ;;  %4333 = vst [vmem:[#allocation14_spill] sm:$0xff] %v3652_v36  ;;  %v3683_v24 = vadd.f32 %v3553_v5, %v3279_v0  ;;  %2881 = vpow2.f32 %v1534_v29  ;;  %v2079_v0 = vsel %vm1331_vm1, %v1951_v2, 0.0  ;;  %v3710_v29 = vadd.f32 %v3284_v3, %v3557_v15 }
 0x189   : > { %2883 = vpow2.f32 %v1524_v31 }
 0x18a   : > { %2068 = vadd.xlane.f32.xlu0 %v2067_v1  ;;  %1444 = vmax.xlane.f32.xlu1 %v1443_v37  ;;  %v2070_v37 = vsel %vm1331_vm1, %v1948_v26, 0.0  ;;  %v1452_v26 = vsel %vm1331_vm1, %v3671_v6, -inf }
 0x18b   : > { %v3665_v10 = vpop.xlane.xlu1 %1342  ;;  %v3667_v36 = vpop.xlane.xlu0 %1336 }
 0x18c   : > { %v1479_v1 = vsub.f32 %v3311_v22, %v3665_v10  ;;  %v1477_v22 = vsub.f32 %v3314_v23, %v3667_v36  ;;  %v1464_v23 = vsel %vm1331_vm1, %v3683_v24, -inf }
 0x18e   : > { %2077 = vadd.xlane.f32.xlu0 %v2076_v7  ;;  %2071 = vadd.xlane.f32.xlu1 %v2070_v37  ;;  %v1530_v4 = vmul.f32 1.442695, %v1479_v1  ;;  %v1526_v54 = vmul.f32 1.442695, %v1477_v22  ;;  %v3716_v1 = vpop.f32.mrf.mxu1 }
 0x18f   : > { %v3689_v18 = vpop.xlane.xlu1 %1969  ;;  %v3691_v38 = vpop.xlane.xlu0 %1345  ;;  %4335 = vst [vmem:[#allocation16_spill] sm:$0xff] %v3716_v1 }
 0x190   : > { %v1480_v46 = vsub.f32 %v3320_v28, %v3691_v38  ;;  %2885 = vpow2.f32 %v1530_v4  ;;  %v3714_v28 = vadd.f32 %v3284_v3, %v3567_v52  ;;  %v1458_v3 = vsel %vm1331_vm1, %v3710_v29, -inf }
 0x191   : > { %2887 = vpow2.f32 %v1526_v54 }
 0x192   : > { %1453 = vmax.xlane.f32.xlu0 %v1452_v26  ;;  %2080 = vadd.xlane.f32.xlu1 %v2079_v0  ;;  %v1532_v2 = vmul.f32 1.442695, %v1480_v46  ;;  %v3718_v26 = vpop.f32.mrf.mxu0  ;;  %v3732_v46 = vadd.f32 %v3308_v21, %v3716_v1 }
 0x193   : > { %v3700_v7 = vpop.xlane.xlu1 %1963  ;;  %v3702_v37 = vpop.xlane.xlu0 %1972 }
 0x194   : > { %4334 = vst [vmem:[#allocation15_spill] sm:$0xff] %v3700_v7  ;;  %2889 = vpow2.f32 %v1532_v2 }
 0x196   : > { %1474 = vmax.xlane.f32.xlu1 %v1473_v13  ;;  %1465 = vmax.xlane.f32.xlu0 %v1464_v23  ;;  %v3736_v13 = vadd.f32 %v3308_v21, %v3718_v26  ;;  %v1467_v23 = vsel %vm1331_vm1, %v3714_v28, -inf  ;;  %v1470_v21 = vsel %vm1331_vm1, %v3732_v46, -inf }
 0x197   : > { %v3720_v0 = vpop.xlane.xlu1 %1366  ;;  %v3722_v31 = vpop.xlane.xlu0 %1357 }
 0x198   : > { %4336 = vst [vmem:[#allocation17_spill] sm:$0xff] %v3720_v0  ;;  %4337 = vst [vmem:[#allocation18_spill] sm:$0xff] %v3722_v31  ;;  %v1487_v22 = vsub.f32 %v3338_v42, %v3720_v0  ;;  %v1484_v4 = vsub.f32 %v3335_v41, %v3722_v31  ;;  %v2880_v31 = vpop.eup %2879  ;;  %v1461_v8 = vsel %vm1331_vm1, %v3736_v13, -inf }
 0x19a   : > { %v1546_v54 = vmul.f32 1.442695, %v1487_v22  ;;  %v1540_v42 = vmul.f32 1.442695, %v1484_v4  ;;  %1468 = vmax.xlane.f32.xlu1 %v1467_v23  ;;  %1459 = vmax.xlane.f32.xlu0 %v1458_v3  ;;  %v2882_v22 = vpop.eup %2881 }
 0x19b   : > { %v3740_v41 = vpop.xlane.xlu1 %1360  ;;  %v3742_v0 = vpop.xlane.xlu0 %1984 }
 0x19c   : > { %4338 = vst [vmem:[#allocation19_spill] sm:$0xff] %v3740_v41  ;;  %4339 = vst [vmem:[#allocation20_spill] sm:$0xff] %v3742_v0  ;;  %2891 = vpow2.f32 %v1546_v54  ;;  %v1485_v2 = vsub.f32 %v3348_v49, %v3740_v41  ;;  %v2884_v54 = vpop.eup %2883  ;;  %v1626_v49 = vsel %vm1331_vm1, %v2880_v31, 0.0 }
 0x19d   : > { %2893 = vpow2.f32 %v1540_v42  ;;  %v1635_v42 = vsel %vm1331_vm1, %v2882_v22, 0.0  ;;  %v2886_v41 = vpop.eup %2885 }
 0x19e   : > { %v1542_v4 = vmul.f32 1.442695, %v1485_v2  ;;  %1471 = vmax.xlane.f32.xlu0 %v1470_v21  ;;  %1462 = vmax.xlane.f32.xlu1 %v1461_v8  ;;  %v2888_v21 = vpop.eup %2887  ;;  %v1629_v31 = vsel %vm1331_vm1, %v2886_v41, 0.0 }
 0x19f   : > { %v3750_v3 = vpop.xlane.xlu1 %1987  ;;  %v3752_v23 = vpop.xlane.xlu0 %1993 }
 0x1a0   : > { %4340 = vst [vmem:[#allocation21_spill] sm:$0xff] %v3750_v3  ;;  %4341 = vst [vmem:[#allocation22_spill] sm:$0xff] %v3752_v23  ;;  %2895 = vpow2.f32 %v1542_v4  ;;  %v1620_v4 = vsel %vm1331_vm1, %v2884_v54, 0.0 }
 0x1a1   : > { %v2890_v23 = vpop.eup %2889 }
 0x1a2   : > { %1627 = vadd.xlane.f32.xlu0 %v1626_v49  ;;  %1636 = vadd.xlane.f32.xlu1 %v1635_v42 }
 0x1a3   : > { %v3756_v0 = vpop.xlane.xlu0 %1351  ;;  %v3758_v7 = vpop.xlane.xlu1 %1354 }
 0x1a4   : > { %4342 = vst [vmem:[#allocation23_spill] sm:$0xff] %v3758_v7  ;;  %v1482_v8 = vsub.f32 %v3356_v59, %v3756_v0  ;;  %v1483_v2 = vsub.f32 %v3359_v60, %v3758_v7  ;;  %v1632_v59 = vsel %vm1331_vm1, %v2890_v23, 0.0  ;;  %v1623_v60 = vsel %vm1331_vm1, %v2888_v21, 0.0 }
 0x1a6   : > { %v1536_v22 = vmul.f32 1.442695, %v1482_v8  ;;  %v1538_v3 = vmul.f32 1.442695, %v1483_v2  ;;  %1621 = vadd.xlane.f32.xlu0 %v1620_v4  ;;  %1630 = vadd.xlane.f32.xlu1 %v1629_v31 }
 0x1a7   : > { %v3766_v49 = vpop.xlane.xlu0 %1978  ;;  %v3768_v42 = vpop.xlane.xlu1 %1981 }
 0x1a8   : > { %2897 = vpow2.f32 %v1536_v22 }
 0x1a9   : > { %v2892_v1 = vpop.eup %2891  ;;  %2899 = vpow2.f32 %v1538_v3 }
 0x1aa   : > { %v2894_v7 = vpop.eup %2893  ;;  %1633 = vadd.xlane.f32.xlu0 %v1632_v59  ;;  %1624 = vadd.xlane.f32.xlu1 %v1623_v60  ;;  %v1653_v3 = vsel %vm1331_vm1, %v2892_v1, 0.0 }
 0x1ab   : > { %v3772_v41 = vpop.xlane.xlu0 %1363  ;;  %v3774_v54 = vpop.xlane.xlu1 %1384  ;;  %v1644_v4 = vsel %vm1331_vm1, %v2894_v7, 0.0 }
 0x1ac   : > { %4343 = vst [vmem:[#allocation24_spill] sm:$0xff] %v3774_v54  ;;  %v1486_v8 = vsub.f32 %v3373_v14, %v3772_v41  ;;  %v1493_v2 = vsub.f32 %v3370_v12, %v3774_v54 }
 0x1ad   : > { %v2896_v23 = vpop.eup %2895 }
 0x1ae   : > { %v1544_v31 = vmul.f32 1.442695, %v1486_v8  ;;  %v1558_v21 = vmul.f32 1.442695, %v1493_v2  ;;  %1645 = vadd.xlane.f32.xlu0 %v1644_v4  ;;  %1654 = vadd.xlane.f32.xlu1 %v1653_v3  ;;  %v1647_v12 = vsel %vm1331_vm1, %v2896_v23, 0.0 }
 0x1af   : > { %v3782_v22 = vpop.xlane.xlu0 %1990  ;;  %v3784_v59 = vpop.xlane.xlu1 %1378 }
 0x1b0   : > { %2901 = vpow2.f32 %v1544_v31  ;;  %v1491_v14 = vsub.f32 %v3381_v20, %v3784_v59 }
 0x1b1   : > { %2903 = vpow2.f32 %v1558_v21 }
 0x1b2   : > { %v1554_v60 = vmul.f32 1.442695, %v1491_v14  ;;  %1648 = vadd.xlane.f32.xlu1 %v1647_v12 }
 0x1b3   : > { %v3789_v7 = vpop.xlane.xlu0 %1375  ;;  %v3791_v1 = vpop.xlane.xlu1 %1996 }
 0x1b4   : > { %4344 = vst [vmem:[#allocation25_spill] sm:$0xff] %v3791_v1  ;;  %2905 = vpow2.f32 %v1554_v60  ;;  %v1490_v8 = vsub.f32 %v3392_v30, %v3789_v7 }
 0x1b5   : > { %v2898_v2 = vpop.eup %2897 }
 0x1b6   : > { %v2900_v4 = vpop.eup %2899  ;;  %v1552_v3 = vmul.f32 1.442695, %v1490_v8  ;;  %v1638_v31 = vsel %vm1331_vm1, %v2898_v2, 0.0 }
 0x1b7   : > { %v3796_v54 = vpop.xlane.xlu0 %2002  ;;  %v3798_v20 = vpop.xlane.xlu1 %2005  ;;  %1639 = vadd.xlane.f32.xlu0 %v1638_v31  ;;  %v1641_v23 = vsel %vm1331_vm1, %v2900_v4, 0.0 }
 0x1b8   : > { %4345 = vst [vmem:[#allocation26_spill] sm:$0xff] %v3796_v54  ;;  %4346 = vst [vmem:[#allocation27_spill] sm:$0xff] %v3798_v20  ;;  %2907 = vpow2.f32 %v1552_v3  ;;  %1642 = vadd.xlane.f32.xlu1 %v1641_v23 }
 0x1bb   : > { %v3801_v21 = vpop.xlane.xlu0 %2011  ;;  %v3803_v14 = vpop.xlane.xlu1 %1372 }
 0x1bc   : > { %4347 = vst [vmem:[#allocation28_spill] sm:$0xff] %v3801_v21  ;;  %v1489_v30 = vsub.f32 %v3407_v45, %v3803_v14 }
 0x1bd   : > { %v2902_v12 = vpop.eup %2901 }
 0x1be   : > { %v2904_v60 = vpop.eup %2903  ;;  %v1550_v8 = vmul.f32 1.442695, %v1489_v30  ;;  %v1650_v2 = vsel %vm1331_vm1, %v2902_v12, 0.0 }
 0x1bf   : > { %v3808_v1 = vpop.xlane.xlu0 %1369  ;;  %v3810_v20 = vpop.xlane.xlu1 %1402  ;;  %1651 = vadd.xlane.f32.xlu0 %v1650_v2  ;;  %v1671_v4 = vsel %vm1331_vm1, %v2904_v60, 0.0 }
 0x1c0   : > { %2909 = vpow2.f32 %v1550_v8  ;;  %v1488_v3 = vsub.f32 %v3416_v51, %v3808_v1  ;;  %v1499_v31 = vsub.f32 %v3413_v48, %v3810_v20  ;;  %1672 = vadd.xlane.f32.xlu1 %v1671_v4 }
 0x1c1   : > { %v2906_v45 = vpop.eup %2905 }
 0x1c2   : > { %v1548_v23 = vmul.f32 1.442695, %v1488_v3  ;;  %v1570_v30 = vmul.f32 1.442695, %v1499_v31  ;;  %v1665_v12 = vsel %vm1331_vm1, %v2906_v45, 0.0 }
 0x1c3   : > { %v3818_v21 = vpop.xlane.xlu0 %1381  ;;  %v3820_v54 = vpop.xlane.xlu1 %1396 }
 0x1c4   : > { %4348 = vst [vmem:[#allocation29_spill] sm:$0xff] %v3820_v54  ;;  %2911 = vpow2.f32 %v1548_v23  ;;  %v1492_v60 = vsub.f32 %v3430_v58, %v3818_v21  ;;  %v1497_v51 = vsub.f32 %v3434_v62, %v3820_v54  ;;  %1666 = vadd.xlane.f32.xlu1 %v1665_v12 }
 0x1c5   : > { %v2908_v8 = vpop.eup %2907  ;;  %2913 = vpow2.f32 %v1570_v30 }
 0x1c6   : > { %v1556_v48 = vmul.f32 1.442695, %v1492_v60  ;;  %v1566_v2 = vmul.f32 1.442695, %v1497_v51  ;;  %v1662_v4 = vsel %vm1331_vm1, %v2908_v8, 0.0 }
 0x1c7   : > { %v3827_v3 = vpop.xlane.xlu0 %1999  ;;  %v3829_v31 = vpop.xlane.xlu1 %2014  ;;  %1663 = vadd.xlane.f32.xlu0 %v1662_v4 }
 0x1c8   : > { %4349 = vst [vmem:[#allocation30_spill] sm:$0xff] %v3829_v31  ;;  %2915 = vpow2.f32 %v1556_v48 }
 0x1c9   : > { %2917 = vpow2.f32 %v1566_v2 }
 0x1cb   : > { %v3831_v45 = vpop.xlane.xlu0 %2008  ;;  %v3833_v58 = vpop.xlane.xlu1 %1390 }
 0x1cc   : > { %v1495_v62 = vsub.f32 %v3447_v17, %v3833_v58 }
 0x1cd   : > { %v2910_v23 = vpop.eup %2909 }
 0x1ce   : > { %v1562_v30 = vmul.f32 1.442695, %v1495_v62  ;;  %v1659_v12 = vsel %vm1331_vm1, %v2910_v23, 0.0 }
 0x1cf   : > { %v3838_v60 = vpop.xlane.xlu0 %1393  ;;  %v3840_v51 = vpop.xlane.xlu1 %1420  ;;  %1660 = vadd.xlane.f32.xlu1 %v1659_v12 }
 0x1d0   : > { %4350 = vst [vmem:[#allocation31_spill] sm:$0xff] %v3838_v60  ;;  %2919 = vpow2.f32 %v1562_v30  ;;  %v1496_v8 = vsub.f32 %v3458_v33, %v3838_v60  ;;  %v1505_v48 = vsub.f32 %v3452_v25, %v3840_v51 }
 0x1d1   : > { %v2912_v2 = vpop.eup %2911 }
 0x1d2   : > { %v2914_v4 = vpop.eup %2913  ;;  %v1564_v31 = vmul.f32 1.442695, %v1496_v8  ;;  %v1582_v17 = vmul.f32 1.442695, %v1505_v48  ;;  %v1656_v62 = vsel %vm1331_vm1, %v2912_v2, 0.0 }
 0x1d3   : > { %v3847_v54 = vpop.xlane.xlu0 %1387  ;;  %v3849_v23 = vpop.xlane.xlu1 %2047  ;;  %1657 = vadd.xlane.f32.xlu0 %v1656_v62  ;;  %v1689_v12 = vsel %vm1331_vm1, %v2914_v4, 0.0 }
 0x1d4   : > { %2921 = vpow2.f32 %v1564_v31  ;;  %v1494_v33 = vsub.f32 %v3473_v43, %v3847_v54  ;;  %1690 = vadd.xlane.f32.xlu1 %v1689_v12 }
 0x1d5   : > { %v2916_v30 = vpop.eup %2915  ;;  %2923 = vpow2.f32 %v1582_v17 }
 0x1d6   : > { %v2918_v25 = vpop.eup %2917  ;;  %v1560_v60 = vmul.f32 1.442695, %v1494_v33  ;;  %v1668_v8 = vsel %vm1331_vm1, %v2916_v30, 0.0 }
 0x1d7   : > { %v3855_v48 = vpop.xlane.xlu0 %1399  ;;  %v3857_v2 = vpop.xlane.xlu1 %1414  ;;  %1669 = vadd.xlane.f32.xlu0 %v1668_v8  ;;  %v1683_v62 = vsel %vm1331_vm1, %v2918_v25, 0.0 }
 0x1d8   : > { %4351 = vst [vmem:[#allocation32_spill] sm:$0xff] %v3855_v48  ;;  %2925 = vpow2.f32 %v1560_v60  ;;  %v1498_v31 = vsub.f32 %v3482_v56, %v3855_v48  ;;  %v1503_v43 = vsub.f32 %v3485_v63, %v3857_v2  ;;  %1684 = vadd.xlane.f32.xlu1 %v1683_v62 }
 0x1da   : > { %v1568_v4 = vmul.f32 1.442695, %v1498_v31  ;;  %v1578_v17 = vmul.f32 1.442695, %v1503_v43 }
 0x1db   : > { %v3864_v12 = vpop.xlane.xlu0 %2017  ;;  %v3866_v33 = vpop.xlane.xlu1 %2032 }
 0x1dc   : > { %4352 = vst [vmem:[#allocation33_spill] sm:$0xff] %v3866_v33  ;;  %2927 = vpow2.f32 %v1568_v4 }
 0x1dd   : > { %v2920_v30 = vpop.eup %2919  ;;  %2929 = vpow2.f32 %v1578_v17 }
 0x1de   : > { %v1677_v8 = vsel %vm1331_vm1, %v2920_v30, 0.0 }
 0x1df   : > { %v3869_v25 = vpop.xlane.xlu0 %1411  ;;  %v3871_v60 = vpop.xlane.xlu1 %2041  ;;  %1678 = vadd.xlane.f32.xlu1 %v1677_v8 }
 0x1e0   : > { %4353 = vst [vmem:[#allocation34_spill] sm:$0xff] %v3869_v25  ;;  %v1502_v56 = vsub.f32 %v3500_v16, %v3869_v25 }
 0x1e1   : > { %v2922_v63 = vpop.eup %2921 }
 0x1e2   : > { %v2924_v62 = vpop.eup %2923  ;;  %v1576_v31 = vmul.f32 1.442695, %v1502_v56  ;;  %v1680_v43 = vsel %vm1331_vm1, %v2922_v63, 0.0 }
 0x1e3   : > { %v3876_v48 = vpop.xlane.xlu0 %2038  ;;  %v3878_v4 = vpop.xlane.xlu1 %1408  ;;  %1681 = vadd.xlane.f32.xlu0 %v1680_v43  ;;  %v1707_v17 = vsel %vm1331_vm1, %v2924_v62, 0.0 }
 0x1e4   : > { %4354 = vst [vmem:[#allocation35_spill] sm:$0xff] %v3876_v48  ;;  %2931 = vpow2.f32 %v1576_v31  ;;  %v1501_v30 = vsub.f32 %v3516_v44, %v3878_v4  ;;  %1708 = vadd.xlane.f32.xlu1 %v1707_v17 }
 0x1e5   : > { %v2926_v8 = vpop.eup %2925 }
 0x1e6   : > { %v1574_v33 = vmul.f32 1.442695, %v1501_v30  ;;  %v1674_v16 = vsel %vm1331_vm1, %v2926_v8, 0.0 }
 0x1e7   : > { %v3884_v25 = vpop.xlane.xlu0 %1405  ;;  %v3886_v56 = vpop.xlane.xlu1 %1438  ;;  %1675 = vadd.xlane.f32.xlu0 %v1674_v16 }
 0x1e8   : > { %4355 = vst [vmem:[#allocation36_spill] sm:$0xff] %v3886_v56  ;;  %2933 = vpow2.f32 %v1574_v33  ;;  %v1500_v63 = vsub.f32 %v3528_v55, %v3884_v25  ;;  %v1511_v62 = vsub.f32 %v3524_v57, %v3886_v56 }
 0x1e9   : > { %v2928_v31 = vpop.eup %2927 }
 0x1ea   : > { %v2930_v43 = vpop.eup %2929  ;;  %v1572_v44 = vmul.f32 1.442695, %v1500_v63  ;;  %v1594_v17 = vmul.f32 1.442695, %v1511_v62  ;;  %v1686_v30 = vsel %vm1331_vm1, %v2928_v31, 0.0 }
 0x1eb   : > { %v3893_v48 = vpop.xlane.xlu0 %1417  ;;  %v3895_v8 = vpop.xlane.xlu1 %2056  ;;  %1687 = vadd.xlane.f32.xlu0 %v1686_v30  ;;  %v1701_v16 = vsel %vm1331_vm1, %v2930_v43, 0.0 }
 0x1ec   : > { %4356 = vst [vmem:[#allocation37_spill] sm:$0xff] %v3895_v8  ;;  %2935 = vpow2.f32 %v1572_v44  ;;  %v1504_v55 = vsub.f32 %v3539_v50, %v3893_v48  ;;  %1702 = vadd.xlane.f32.xlu1 %v1701_v16 }
 0x1ed   : > { %2937 = vpow2.f32 %v1594_v17 }
 0x1ee   : > { %v1580_v57 = vmul.f32 1.442695, %v1504_v55 }
 0x1ef   : > { %v3900_v33 = vpop.xlane.xlu0 %2035  ;;  %v3902_v63 = vpop.xlane.xlu1 %2065 }
 0x1f0   : > { %4357 = vst [vmem:[#allocation38_spill] sm:$0xff] %v3900_v33  ;;  %4358 = vst [vmem:[#allocation39_spill] sm:$0xff] %v3902_v63  ;;  %2939 = vpow2.f32 %v1580_v57 }
 0x1f1   : > { %v2932_v62 = vpop.eup %2931 }
 0x1f2   : > { %v1698_v31 = vsel %vm1331_vm1, %v2932_v62, 0.0 }
 0x1f3   : > { %v3905_v56 = vpop.xlane.xlu0 %2044  ;;  %v3907_v30 = vpop.xlane.xlu1 %1432  ;;  %1699 = vadd.xlane.f32.xlu0 %v1698_v31 }
 0x1f4   : > { %4359 = vst [vmem:[#allocation40_spill] sm:$0xff] %v3907_v30  ;;  %v1509_v43 = vsub.f32 %v3563_v32, %v3907_v30 }
 0x1f5   : > { %v2934_v50 = vpop.eup %2933 }
 0x1f6   : > { %v1590_v44 = vmul.f32 1.442695, %v1509_v43  ;;  %v1695_v17 = vsel %vm1331_vm1, %v2934_v50, 0.0 }
 0x1f7   : > { %v3912_v16 = vpop.xlane.xlu0 %1429  ;;  %v3914_v55 = vpop.xlane.xlu1 %1426  ;;  %1696 = vadd.xlane.f32.xlu1 %v1695_v17 }
 0x1f8   : > { %4360 = vst [vmem:[#allocation41_spill] sm:$0xff] %v3912_v16  ;;  %2941 = vpow2.f32 %v1590_v44  ;;  %v1508_v57 = vsub.f32 %v3571_v35, %v3912_v16  ;;  %v1507_v62 = vsub.f32 %v3574_v34, %v3914_v55 }
 0x1f9   : > { %v2936_v31 = vpop.eup %2935 }
 0x1fa   : > { %v2938_v63 = vpop.eup %2937  ;;  %v1588_v8 = vmul.f32 1.442695, %v1508_v57  ;;  %v1586_v32 = vmul.f32 1.442695, %v1507_v62  ;;  %v1692_v43 = vsel %vm1331_vm1, %v2936_v31, 0.0 }
 0x1fb   : > { %v3921_v30 = vpop.xlane.xlu0 %1423  ;;  %v3923_v50 = vpop.xlane.xlu1 %2053  ;;  %1693 = vadd.xlane.f32.xlu0 %v1692_v43  ;;  %v1725_v17 = vsel %vm1331_vm1, %v2938_v63, 0.0 }
 0x1fc   : > { %4361 = vst [vmem:[#allocation42_spill] sm:$0xff] %v3923_v50  ;;  %2943 = vpow2.f32 %v1588_v8  ;;  %v1506_v35 = vsub.f32 %v3581_v53, %v3921_v30  ;;  %1726 = vadd.xlane.f32.xlu1 %v1725_v17 }
 0x1fd   : > { %v2940_v44 = vpop.eup %2939  ;;  %2945 = vpow2.f32 %v1586_v32 }
 0x1fe   : > { %v1584_v34 = vmul.f32 1.442695, %v1506_v35  ;;  %v1704_v57 = vsel %vm1331_vm1, %v2940_v44, 0.0 }
 0x1ff   : > { %v3929_v62 = vpop.xlane.xlu0 %2050  ;;  %v3931_v31 = vpop.xlane.xlu1 %2062  ;;  %1705 = vadd.xlane.f32.xlu0 %v1704_v57 }
 0x200   : > { %4362 = vst [vmem:[#allocation43_spill] sm:$0xff] %v3929_v62  ;;  %4363 = vst [vmem:[#allocation44_spill] sm:$0xff] %v3931_v31  ;;  %2947 = vpow2.f32 %v1584_v34 }
 0x203   : > { %v3933_v50 = vpop.xlane.xlu0 %2059  ;;  %v3935_v43 = vpop.xlane.xlu1 %1456 }
 0x204   : > { %4364 = vst [vmem:[#allocation45_spill] sm:$0xff] %v3933_v50  ;;  %4365 = vst [vmem:[#allocation46_spill] sm:$0xff] %v3935_v43  ;;  %v1517_v8 = vsub.f32 %v3597_v11, %v3935_v43 }
 0x205   : > { %v2942_v53 = vpop.eup %2941 }
 0x206   : > { %v1606_v63 = vmul.f32 1.442695, %v1517_v8  ;;  %v1719_v32 = vsel %vm1331_vm1, %v2942_v53, 0.0 }
 0x207   : > { %v3940_v17 = vpop.xlane.xlu0 %1435  ;;  %v3942_v35 = vpop.xlane.xlu1 %2074  ;;  %1720 = vadd.xlane.f32.xlu1 %v1719_v32 }
 0x208   : > { %4366 = vst [vmem:[#allocation47_spill] sm:$0xff] %v3940_v17  ;;  %4367 = vst [vmem:[#allocation48_spill] sm:$0xff] %v3942_v35  ;;  %2949 = vpow2.f32 %v1606_v63  ;;  %v1510_v44 = vsub.f32 %v3609_v19, %v3940_v17 }
 0x209   : > { %v2944_v34 = vpop.eup %2943 }
 0x20a   : > { %v2946_v57 = vpop.eup %2945  ;;  %v1592_v50 = vmul.f32 1.442695, %v1510_v44  ;;  %v1716_v31 = vsel %vm1331_vm1, %v2944_v34, 0.0  ;;  %v4372_v34 = vld [vmem:[#allocation11_spill] sm:$0xff] }
 0x20b   : > { %v3947_v16 = vpop.xlane.xlu1 %2083  ;;  %v3949_v11 = vpop.xlane.xlu0 %1447  ;;  %1717 = vadd.xlane.f32.xlu0 %v1716_v31  ;;  %v1713_v8 = vsel %vm1331_vm1, %v2946_v57, 0.0  ;;  %v4373_v57 = vld [vmem:[#allocation12_spill] sm:$0xff] }
 0x20c   : > { %4368 = vst [vmem:[#allocation49_spill] sm:$0xff] %v3947_v16  ;;  %4369 = vst [vmem:[#allocation50_spill] sm:$0xff] %v3949_v11  ;;  %2951 = vpow2.f32 %v1592_v50  ;;  %v1514_v53 = vsub.f32 %v3617_v27, %v3949_v11  ;;  %1714 = vadd.xlane.f32.xlu1 %v1713_v8 }
 0x20d   : > { %v2948_v63 = vpop.eup %2947 }
 0x20e   : > { %v1600_v32 = vmul.f32 1.442695, %v1514_v53  ;;  %v1710_v19 = vsel %vm1331_vm1, %v2948_v63, 0.0 }
 0x20f   : > { %v3955_v35 = vpop.xlane.xlu1 %1450  ;;  %v3957_v44 = vpop.xlane.xlu0 %1441  ;;  %1711 = vadd.xlane.f32.xlu0 %v1710_v19 }
 0x210   : > { %4370 = vst [vmem:[#allocation51_spill] sm:$0xff] %v3955_v35  ;;  %4371 = vst [vmem:[#allocation52_spill] sm:$0xff] %v3957_v44  ;;  %2953 = vpow2.f32 %v1600_v32  ;;  %v1515_v31 = vsub.f32 %v4372_v34, %v3955_v35  ;;  %v1512_v50 = vsub.f32 %v4373_v57, %v3957_v44  ;;  %v4388_v44 = vld [vmem:[#allocation7_spill] sm:$0xff] }
 0x212   : > { %v1602_v16 = vmul.f32 1.442695, %v1515_v31  ;;  %v1596_v43 = vmul.f32 1.442695, %v1512_v50 }
 0x213   : > { %v3963_v27 = vpop.xlane.xlu0 %2068  ;;  %v3965_v8 = vpop.xlane.xlu1 %1444 }
 0x214   : > { %4374 = vst [vmem:[#allocation11_spill] sm:$0xff] %v3963_v27  ;;  %4375 = vst [vmem:[#allocation12_spill] sm:$0xff] %v3965_v8  ;;  %2955 = vpow2.f32 %v1602_v16  ;;  %v1513_v53 = vsub.f32 %v3644_v47, %v3965_v8 }
 0x215   : > { %v2950_v63 = vpop.eup %2949  ;;  %2957 = vpow2.f32 %v1596_v43 }
 0x216   : > { %v1598_v19 = vmul.f32 1.442695, %v1513_v53  ;;  %v1743_v32 = vsel %vm1331_vm1, %v2950_v63, 0.0 }
 0x217   : > { %v3970_v11 = vpop.xlane.xlu0 %2077  ;;  %v3972_v34 = vpop.xlane.xlu1 %2071  ;;  %1744 = vadd.xlane.f32.xlu1 %v1743_v32 }
 0x218   : > { %4376 = vst [vmem:[#allocation53_spill] sm:$0xff] %v3970_v11  ;;  %4377 = vst [vmem:[#allocation54_spill] sm:$0xff] %v3972_v34  ;;  %2959 = vpow2.f32 %v1598_v19 }
 0x219   : > { %v2952_v31 = vpop.eup %2951 }
 0x21a   : > { %v1722_v57 = vsel %vm1331_vm1, %v2952_v31, 0.0 }
 0x21b   : > { %v3975_v50 = vpop.xlane.xlu0 %1453  ;;  %v3977_v16 = vpop.xlane.xlu1 %2080  ;;  %1723 = vadd.xlane.f32.xlu0 %v1722_v57 }
 0x21c   : > { %4378 = vst [vmem:[#allocation55_spill] sm:$0xff] %v3975_v50  ;;  %4379 = vst [vmem:[#allocation56_spill] sm:$0xff] %v3977_v16  ;;  %v1516_v47 = vsub.f32 %v3671_v6, %v3975_v50 }
 0x21d   : > { %v2954_v43 = vpop.eup %2953 }
 0x21e   : > { %v1604_v53 = vmul.f32 1.442695, %v1516_v47  ;;  %v1734_v63 = vsel %vm1331_vm1, %v2954_v43, 0.0 }
 0x21f   : > { %v3982_v11 = vpop.xlane.xlu1 %1474  ;;  %v3984_v35 = vpop.xlane.xlu0 %1465  ;;  %1735 = vadd.xlane.f32.xlu0 %v1734_v63 }
 0x220   : > { %4380 = vst [vmem:[#allocation57_spill] sm:$0xff] %v3982_v11  ;;  %4381 = vst [vmem:[#allocation58_spill] sm:$0xff] %v3984_v35  ;;  %2961 = vpow2.f32 %v1604_v53  ;;  %v1523_v19 = vsub.f32 %v3687_v9, %v3982_v11  ;;  %v1520_v32 = vsub.f32 %v3683_v24, %v3984_v35  ;;  %v3072_v11 = vld [vmem:[%s3277_s9] sm:$0xff] }
 0x221   : > { %v2956_v31 = vpop.eup %2955 }
 0x222   : > { %v2958_v57 = vpop.eup %2957  ;;  %v1618_v16 = vmul.f32 1.442695, %v1523_v19  ;;  %v1612_v6 = vmul.f32 1.442695, %v1520_v32  ;;  %v1737_v47 = vsel %vm1331_vm1, %v2956_v31, 0.0 }
 0x223   : > { %v3991_v27 = vpop.xlane.xlu1 %1468  ;;  %v1728_v43 = vsel %vm1331_vm1, %v2958_v57, 0.0  ;;  %v3994_v50 = vpop.xlane.xlu0 %1459  ;;  %1738 = vadd.xlane.f32.xlu1 %v1737_v47 }
 0x224   : > { %4382 = vst [vmem:[#allocation59_spill] sm:$0xff] %v3991_v27  ;;  %4383 = vst [vmem:[#allocation60_spill] sm:$0xff] %v3994_v50  ;;  %2963 = vpow2.f32 %v1618_v16  ;;  %v1521_v9 = vsub.f32 %v3714_v28, %v3991_v27  ;;  %1729 = vadd.xlane.f32.xlu0 %v1728_v43  ;;  %v1518_v24 = vsub.f32 %v3710_v29, %v3994_v50  ;;  %v4387_v50 = vld [vmem:[#allocation6_spill] sm:$0xff] }
 0x225   : > { %v2960_v53 = vpop.eup %2959  ;;  %2965 = vpow2.f32 %v1612_v6 }
 0x226   : > { %v1614_v63 = vmul.f32 1.442695, %v1521_v9  ;;  %v1608_v19 = vmul.f32 1.442695, %v1518_v24  ;;  %v1731_v32 = vsel %vm1331_vm1, %v2960_v53, 0.0 }
 0x227   : > { %v4001_v31 = vpop.xlane.xlu0 %1471  ;;  %1732 = vadd.xlane.f32.xlu1 %v1731_v32  ;;  %v4003_v57 = vpop.xlane.xlu1 %1462 }
 0x228   : > { %4384 = vst [vmem:[#allocation61_spill] sm:$0xff] %v4001_v31  ;;  %4385 = vst [vmem:[#allocation62_spill] sm:$0xff] %v4003_v57  ;;  %2967 = vpow2.f32 %v1614_v63  ;;  %v1522_v16 = vsub.f32 %v3732_v46, %v4001_v31  ;;  %v1519_v28 = vsub.f32 %v3736_v13, %v4003_v57  ;;  %v3073_v57 = vld [vmem:[%s3277_s9 + $0x8] sm:$0xff] }
 0x229   : > { %2969 = vpow2.f32 %v1608_v19 }
 0x22a   : > { %v1616_v29 = vmul.f32 1.442695, %v1522_v16  ;;  %v1610_v47 = vmul.f32 1.442695, %v1519_v28 }
 0x22b   : > { %v1628_v6 = vpop.xlane.xlu0 %1627  ;;  %v1637_v43 = vpop.xlane.xlu1 %1636 }
 0x22c   : > { %2971 = vpow2.f32 %v1616_v29 }
 0x22d   : > { %v2962_v9 = vpop.eup %2961  ;;  %2973 = vpow2.f32 %v1610_v47 }
 0x22e   : > { %2975 = vlog2.f32 %v1628_v6  ;;  %v1740_v24 = vsel %vm1331_vm1, %v2962_v9, 0.0 }
 0x22f   : > { %2977 = vlog2.f32 %v1637_v43  ;;  %1741 = vadd.xlane.f32.xlu0 %v1740_v24  ;;  %v1622_v53 = vpop.xlane.xlu0 %1621  ;;  %v1631_v63 = vpop.xlane.xlu1 %1630  ;;  %v2199_v24 = vlaneseq }
 0x230   : > { %2979 = vlog2.f32 %v1622_v53 }
 0x231   : > { %v2964_v46 = vpop.eup %2963  ;;  %2981 = vlog2.f32 %v1631_v63  ;;  %v2200_v35 = vand.u32 127, %v2199_v24 }
 0x232   : > { %v2966_v32 = vpop.eup %2965  ;;  %v1761_v13 = vsel %vm1331_vm1, %v2964_v46, 0.0 }
 0x233   : > { %v1752_v19 = vsel %vm1331_vm1, %v2966_v32, 0.0  ;;  %v1634_v16 = vpop.xlane.xlu0 %1633  ;;  %1762 = vadd.xlane.f32.xlu1 %v1761_v13  ;;  %v1625_v28 = vpop.xlane.xlu1 %1624  ;;  %v4015_v32 = vld [vmem:[%s3277_s9 + $0x10] sm:$0xff]  ;;  %v4386_v13 = vld [vmem:[#allocation5_spill] sm:$0xff]  ;;  %v2212_v33 = vadd.s32 4294967280, %v2200_v35  ;;  %v2205_v62 = vadd.s32 4294967288, %v2200_v35 }
 0x234   : > { %1753 = vadd.xlane.f32.xlu0 %v1752_v19  ;;  %2983 = vlog2.f32 %v1634_v16  ;;  %v1931_v19 = vmul.f32 %v4015_v32, %v4386_v13  ;;  %v4027_v13 = vmul.f32 %v4015_v32, %v4387_v50 }
 0x235   : > { %v2968_v29 = vpop.eup %2967  ;;  %2985 = vlog2.f32 %v1625_v28 }
 0x236   : > { %v2970_v47 = vpop.eup %2969  ;;  %v1755_v6 = vsel %vm1331_vm1, %v2968_v29, 0.0  ;;  %v1953_v29 = vmul.f32 %v3072_v11, %v3557_v15  ;;  %v1932_v15 = vmul.f32 %v3072_v11, %v4388_v44 }
 0x237   : > { %v1746_v43 = vsel %vm1331_vm1, %v2970_v47, 0.0  ;;  %1756 = vadd.xlane.f32.xlu1 %v1755_v6  ;;  %v1655_v9 = vpop.xlane.xlu1 %1654  ;;  %v1646_v53 = vpop.xlane.xlu0 %1645  ;;  %v1954_v47 = vmul.f32 %v3073_v57, %v3718_v26  ;;  %v2019_v26 = vsel %vm1331_vm1, %v1931_v19, 0.0 }
 0x238   : > { %1747 = vadd.xlane.f32.xlu0 %v1746_v43  ;;  %2987 = vlog2.f32 %v1646_v53 }
 0x239   : > { %v2972_v63 = vpop.eup %2971  ;;  %2989 = vlog2.f32 %v1655_v9 }
 0x23a   : > { %v2974_v46 = vpop.eup %2973  ;;  %v1758_v16 = vsel %vm1331_vm1, %v2972_v63, 0.0 }
 0x23b   : > { %v2976_v28 = vpop.eup %2975  ;;  %v1749_v6 = vsel %vm1331_vm1, %v2974_v46, 0.0  ;;  %v1649_v43 = vpop.xlane.xlu1 %1648  ;;  %v2085_v46 = vsel %vm1331_vm1, %v1953_v29, 0.0 }
 0x23c   : > { %v2978_v31 = vpop.eup %2977  ;;  %1759 = vadd.xlane.f32.xlu0 %v1758_v16  ;;  %1750 = vadd.xlane.f32.xlu1 %v1749_v6  ;;  %v1769_v8 = vmul.f32 0.6931472, %v2976_v28  ;;  %v2088_v16 = vsel %vm1331_vm1, %v1954_v47, 0.0  ;;  %v2202_v6 = vshrl.u32 %v2199_v24, 7  ;;  %2991 = vlog2.f32 %v1649_v43  ;;  %v4389_v28 = vld [vmem:[#allocation8_spill] sm:$0xff] }
 0x23d   : > { %v2980_v27 = vpop.eup %2979  ;;  %v1775_v63 = vmul.f32 0.6931472, %v2978_v31  ;;  %v1933_v29 = vmul.f32 %v3073_v57, %v4389_v28  ;;  %v1955_v43 = vmul.f32 %v4015_v32, %v3553_v5 }
 0x23e   : > { %v2982_v34 = vpop.eup %2981  ;;  %v1765_v17 = vmul.f32 0.6931472, %v2980_v27  ;;  %v1862_v24 = vadd.f32 %v1769_v8, %v3623_v61  ;;  %v4390_v61 = vld [vmem:[#allocation13_spill] sm:$0xff] }
 0x23f   : > { %v1771_v53 = vmul.f32 0.6931472, %v2982_v34  ;;  %v1865_v44 = vadd.f32 %v1775_v63, %v3636_v40  ;;  %v2022_v40 = vsel %vm1331_vm1, %v1932_v15, 0.0  ;;  %v4047_v63 = vsub.s32 %v2212_v33, %v2202_v6 }
 0x240   : > { %2086 = vadd.xlane.f32.xlu0 %v2085_v46  ;;  %2089 = vadd.xlane.f32.xlu1 %v2088_v16  ;;  %v1640_v50 = vpop.xlane.xlu0 %1639  ;;  %v1860_v27 = vadd.f32 %v1765_v17, %v3638_v39  ;;  %v4040_v46 = vsub.s32 %v2200_v35, %v2202_v6  ;;  %v1956_v35 = vmul.f32 %v3072_v11, %v3567_v52 }
 0x241   : > { %v2984_v31 = vpop.eup %2983  ;;  %v1863_v19 = vadd.f32 %v1771_v53, %v3665_v10  ;;  %2993 = vlog2.f32 %v1640_v50  ;;  %v1643_v34 = vpop.xlane.xlu1 %1642  ;;  %v4044_v10 = vsub.s32 %v2205_v62, %v2202_v6  ;;  %v2108_v8 = vsub.f32 %v1865_v44, %v4390_v61  ;;  %v4391_v53 = vld [vmem:[#allocation14_spill] sm:$0xff] }
 0x242   : > { %v2986_v9 = vpop.eup %2985  ;;  %v1773_v47 = vmul.f32 0.6931472, %v2984_v31  ;;  %2995 = vlog2.f32 %v1643_v34  ;;  %v2103_v50 = vsub.f32 %v1860_v27, %v4391_v53  ;;  %v4392_v31 = vld [vmem:[#allocation10_spill] sm:$0xff]  ;;  %v2025_v62 = vsel %vm1331_vm1, %v1933_v29, 0.0  ;;  %v4395_v34 = vld [vmem:[#allocation9_spill] sm:$0xff] }
 0x243   : > { %v1767_v16 = vmul.f32 0.6931472, %v2986_v9  ;;  %v2106_v39 = vsub.f32 %v1863_v19, %v3689_v18  ;;  %v2105_v15 = vsub.f32 %v1862_v24, %v4392_v31  ;;  %v4393_v19 = vld [vmem:[#allocation16_spill] sm:$0xff]  ;;  %v2091_v6 = vsel %vm1331_vm1, %v1955_v43, 0.0 }
 0x244   : > { %v1864_v17 = vadd.f32 %v1773_v47, %v3691_v38  ;;  %2020 = vadd.xlane.f32.xlu0 %v2019_v26  ;;  %2023 = vadd.xlane.f32.xlu1 %v2022_v40  ;;  %v1957_v38 = vmul.f32 %v3073_v57, %v4393_v19  ;;  %v4394_v26 = vld [vmem:[#allocation15_spill] sm:$0xff]  ;;  %v1958_v27 = vmul.f32 %v4015_v32, %v4395_v34  ;;  %v2094_v32 = vsel %vm1331_vm1, %v1956_v35, 0.0 }
 0x245   : > { %v1861_v5 = vadd.f32 %v1767_v16, %v3667_v36  ;;  %v2988_v44 = vpop.eup %2987  ;;  %v2222_v36 = vrot.slane %v2106_v39, %v4040_v46  ;;  %v2231_v11 = vrot.slane %v2108_v8, %v4047_v63  ;;  %v2204_v57 = vrot.slane %v2103_v50, %v4040_v46 }
 0x246   : > { %v2107_v18 = vsub.f32 %v1864_v17, %v3702_v37  ;;  %v2216_v28 = vrot.slane %v2105_v15, %v4047_v63  ;;  %v1781_v43 = vmul.f32 0.6931472, %v2988_v44  ;;  %v2097_v16 = vsel %vm1331_vm1, %v1957_v38, 0.0  ;;  %v2990_v40 = vpop.eup %2989  ;;  %v4398_v44 = vld [vmem:[#allocation20_spill] sm:$0xff] }
 0x247   : > { %v2104_v33 = vsub.f32 %v1861_v5, %v4394_v26  ;;  %v4396_v5 = vld [vmem:[#allocation18_spill] sm:$0xff]  ;;  %v2028_v15 = vsel %vm1331_vm1, %v4027_v13, 0.0  ;;  %v1787_v26 = vmul.f32 0.6931472, %v2990_v40  ;;  %v4399_v13 = vld [vmem:[#allocation19_spill] sm:$0xff] }
 0x248   : > { %v2226_v52 = vrot.slane %v2107_v18, %v4044_v10  ;;  %2026 = vadd.xlane.f32.xlu0 %v2025_v62  ;;  %2092 = vadd.xlane.f32.xlu1 %v2091_v6  ;;  %v1652_v37 = vpop.xlane.xlu0 %1651  ;;  %v1868_v35 = vadd.f32 %v1781_v43, %v4396_v5  ;;  %v2100_v18 = vsel %vm1331_vm1, %v1958_v27, 0.0 }
 0x249   : > { %v2209_v9 = vrot.slane %v2104_v33, %v4044_v10  ;;  %2997 = vlog2.f32 %v1652_v37  ;;  %v2992_v17 = vpop.eup %2991  ;;  %v1673_v53 = vpop.xlane.xlu1 %1672  ;;  %v4397_v33 = vld [vmem:[#allocation23_spill] sm:$0xff] }
 0x24a   : > { %v2227_v29 = vsel %vm2210_vm2, %v2226_v52, %v2222_v36  ;;  %v1783_v19 = vmul.f32 0.6931472, %v2992_v17  ;;  %v2111_v34 = vsub.f32 %v1868_v35, %v4398_v44 }
 0x24b   : > { %v2232_v24 = vsel %vm2217_vm3, %v2231_v11, %v2227_v29  ;;  %v2211_v47 = vsel %vm2210_vm2, %v2209_v9, %v2204_v57 }
 0x24c   : > { %v2218_v39 = vsel %vm2217_vm3, %v2216_v28, %v2211_v47  ;;  %2095 = vadd.xlane.f32.xlu0 %v2094_v32  ;;  %2098 = vadd.xlane.f32.xlu1 %v2097_v16  ;;  %v1869_v57 = vadd.f32 %v1783_v19, %v4399_v13  ;;  %v4400_v28 = vld [vmem:[#allocation17_spill] sm:$0xff]  ;;  %v2245_v32 = vrot.slane %v2111_v34, %v4047_v63 }
 0x24d   : > { %v2430_v61 = vsel %vm2429_vm4, %v2232_v24, %v2218_v39  ;;  %v1667_v11 = vpop.xlane.xlu1 %1666  ;;  %v1871_v29 = vadd.f32 %v1787_v26, %v4400_v28  ;;  %v4402_v39 = vld [vmem:[#allocation22_spill] sm:$0xff] }
 0x24e   : > { %v2994_v8 = vpop.eup %2993 }
 0x24f   : > { %v2996_v50 = vpop.eup %2995  ;;  %v1777_v31 = vmul.f32 0.6931472, %v2994_v8  ;;  %v2114_v17 = vsub.f32 %v1871_v29, %v4402_v39  ;;  %v4404_v29 = vld [vmem:[#allocation26_spill] sm:$0xff] }
 0x250   : > { %v1779_v62 = vmul.f32 0.6931472, %v2996_v50  ;;  %2029 = vadd.xlane.f32.xlu0 %v2028_v15  ;;  %2101 = vadd.xlane.f32.xlu1 %v2100_v18  ;;  %v1664_v52 = vpop.xlane.xlu0 %1663 }
 0x251   : > { %v1866_v38 = vadd.f32 %v1777_v31, %v3756_v0  ;;  %2999 = vlog2.f32 %v1664_v52  ;;  %v2259_v15 = vrot.slane %v2114_v17, %v4047_v63 }
 0x252   : > { %v1867_v6 = vadd.f32 %v1779_v62, %v4397_v33  ;;  %3001 = vlog2.f32 %v1667_v11 }
 0x253   : > { %v2109_v36 = vsub.f32 %v1866_v38, %v3766_v49 }
 0x254   : > { %v2110_v37 = vsub.f32 %v1867_v6, %v3768_v42  ;;  %v4401_v42 = vld [vmem:[#allocation21_spill] sm:$0xff] }
 0x255   : > { %v2236_v27 = vrot.slane %v2109_v36, %v4040_v46  ;;  %v2112_v43 = vsub.f32 %v1869_v57, %v4401_v42 }
 0x256   : > { %v2998_v9 = vpop.eup %2997  ;;  %v2240_v0 = vrot.slane %v2110_v37, %v4044_v10 }
 0x257   : > { %v1785_v24 = vmul.f32 0.6931472, %v2998_v9  ;;  %v2250_v35 = vrot.slane %v2112_v43, %v4040_v46  ;;  %v4403_v9 = vld [vmem:[#allocation24_spill] sm:$0xff] }
 0x258   : > { %v2241_v49 = vsel %vm2210_vm2, %v2240_v0, %v2236_v27  ;;  %v1661_v47 = vpop.xlane.xlu1 %1660  ;;  %v4407_v43 = vld [vmem:[#allocation28_spill] sm:$0xff] }
 0x259   : > { %v2246_v16 = vsel %vm2217_vm3, %v2245_v32, %v2241_v49  ;;  %v1870_v40 = vadd.f32 %v1785_v24, %v3772_v41  ;;  %3003 = vlog2.f32 %v1661_v47  ;;  %v4405_v32 = vld [vmem:[#allocation25_spill] sm:$0xff] }
 0x25a   : > { %3005 = vlog2.f32 %v1673_v53  ;;  %v2432_v8 = vsel %vm2431_vm5, %v2246_v16, %v2430_v61 }
 0x25b   : > { %v2113_v50 = vsub.f32 %v1870_v40, %v3782_v22 }
 0x25c   : > { %v1658_v5 = vpop.xlane.xlu0 %1657 }
 0x25d   : > { %v2254_v31 = vrot.slane %v2113_v50, %v4044_v10  ;;  %3007 = vlog2.f32 %v1658_v5 }
 0x25e   : > { %v3000_v61 = vpop.eup %2999 }
 0x25f   : > { %v2255_v18 = vsel %vm2210_vm2, %v2254_v31, %v2250_v35  ;;  %v3002_v19 = vpop.eup %3001  ;;  %v1793_v38 = vmul.f32 0.6931472, %v3000_v61 }
 0x260   : > { %v2260_v41 = vsel %vm2217_vm3, %v2259_v15, %v2255_v18  ;;  %v1670_v62 = vpop.xlane.xlu0 %1669  ;;  %v1795_v6 = vmul.f32 0.6931472, %v3002_v19  ;;  %v1691_v15 = vpop.xlane.xlu1 %1690 }
 0x261   : > { %3009 = vlog2.f32 %v1670_v62  ;;  %v2434_v53 = vsel %vm2433_vm6, %v2260_v41, %v2432_v8  ;;  %v1874_v52 = vadd.f32 %v1793_v38, %v3789_v7 }
 0x262   : > { %v1875_v11 = vadd.f32 %v1795_v6, %v3784_v59  ;;  %3011 = vlog2.f32 %v1691_v15 }
 0x263   : > { %v2117_v0 = vsub.f32 %v1874_v52, %v4404_v29 }
 0x264   : > { %v1685_v18 = vpop.xlane.xlu1 %1684 }
 0x265   : > { %3013 = vlog2.f32 %v1685_v18 }
 0x266   : > { %v3004_v22 = vpop.eup %3003 }
 0x267   : > { %v3006_v26 = vpop.eup %3005  ;;  %v1791_v33 = vmul.f32 0.6931472, %v3004_v22 }
 0x268   : > { %v1799_v36 = vmul.f32 0.6931472, %v3006_v26  ;;  %v1679_v62 = vpop.xlane.xlu1 %1678 }
 0x269   : > { %v1873_v44 = vadd.f32 %v1791_v33, %v3803_v14  ;;  %v4406_v14 = vld [vmem:[#allocation27_spill] sm:$0xff]  ;;  %3015 = vlog2.f32 %v1679_v62 }
 0x26a   : > { %v3008_v34 = vpop.eup %3007  ;;  %v1877_v28 = vadd.f32 %v1799_v36, %v4403_v9  ;;  %v2118_v47 = vsub.f32 %v1875_v11, %v4406_v14 }
 0x26b   : > { %v1789_v37 = vmul.f32 0.6931472, %v3008_v34  ;;  %v2116_v13 = vsub.f32 %v1873_v44, %v3827_v3 }
 0x26c   : > { %v2120_v3 = vsub.f32 %v1877_v28, %v4407_v43  ;;  %v2278_v17 = vrot.slane %v2118_v47, %v4040_v46 }
 0x26d   : > { %v1872_v57 = vadd.f32 %v1789_v37, %v3808_v1  ;;  %v2268_v42 = vrot.slane %v2116_v13, %v4044_v10  ;;  %v2273_v1 = vrot.slane %v2117_v0, %v4047_v63  ;;  %v1709_v19 = vpop.xlane.xlu1 %1708 }
 0x26e   : > { %v3010_v27 = vpop.eup %3009  ;;  %v2287_v5 = vrot.slane %v2120_v3, %v4047_v63 }
 0x26f   : > { %v2115_v24 = vsub.f32 %v1872_v57, %v4405_v32  ;;  %v1797_v49 = vmul.f32 0.6931472, %v3010_v27  ;;  %v3012_v27 = vpop.eup %3011 }
 0x271   : > { %v2264_v7 = vrot.slane %v2115_v24, %v4040_v46  ;;  %v1876_v59 = vadd.f32 %v1797_v49, %v3818_v21 }
 0x272   : > { %v3014_v9 = vpop.eup %3013 }
 0x273   : > { %v2269_v16 = vsel %vm2210_vm2, %v2268_v42, %v2264_v7  ;;  %v2119_v40 = vsub.f32 %v1876_v59, %v3831_v45  ;;  %v1682_v45 = vpop.xlane.xlu0 %1681 }
 0x274   : > { %v2274_v39 = vsel %vm2217_vm3, %v2273_v1, %v2269_v16  ;;  %3017 = vlog2.f32 %v1682_v45 }
 0x275   : > { %v2282_v8 = vrot.slane %v2119_v40, %v4044_v10  ;;  %v2436_v50 = vsel %vm2435_vm7, %v2274_v39, %v2434_v53  ;;  %v1703_v53 = vpop.xlane.xlu1 %1702  ;;  %3019 = vlog2.f32 %v1709_v19 }
 0x276   : > { %v3016_v28 = vpop.eup %3015 }
 0x277   : > { %v2283_v21 = vsel %vm2210_vm2, %v2282_v8, %v2278_v17  ;;  %v1676_v41 = vpop.xlane.xlu0 %1675  ;;  %v1803_v14 = vmul.f32 0.6931472, %v3016_v28 }
 0x278   : > { %v2288_v35 = vsel %vm2217_vm3, %v2287_v5, %v2283_v21  ;;  %3021 = vlog2.f32 %v1676_v41 }
 0x279   : > { %v4125_v31 = vsel %vm2437_vm8, %v2288_v35, %v2436_v50  ;;  %3023 = vlog2.f32 %v1703_v53  ;;  %v1879_v3 = vadd.f32 %v1803_v14, %v3833_v58  ;;  %v1811_v50 = vmul.f32 0.6931472, %v3012_v27 }
 0x27a   : > { %v1807_v35 = vmul.f32 0.6931472, %v3014_v9 }
 0x27b   : > { %v4127_v61 = vpop.xlane.xlu0 %1687  ;;  %v2122_v15 = vsub.f32 %v1879_v3, %v3864_v12 }
 0x27f   : > { %v1700_v22 = vpop.xlane.xlu0 %1699 }
 0x280   : > { %v1697_v26 = vpop.xlane.xlu1 %1696  ;;  %3025 = vlog2.f32 %v1700_v22 }
 0x281   : > { %v3018_v29 = vpop.eup %3017 }
 0x282   : > { %v3020_v32 = vpop.eup %3019  ;;  %v1805_v45 = vmul.f32 0.6931472, %v3018_v29 }
 0x283   : > { %v1823_v7 = vmul.f32 0.6931472, %v3020_v32 }
 0x284   : > { %v1694_v38 = vpop.xlane.xlu0 %1693 }
 0x285   : > { %v1727_v6 = vpop.xlane.xlu1 %1726  ;;  %3027 = vlog2.f32 %v1694_v38  ;;  %v3022_v49 = vpop.eup %3021  ;;  %v1889_v39 = vadd.f32 %v1823_v7, %v3840_v51 }
 0x286   : > { %v3024_v47 = vpop.eup %3023  ;;  %v1801_v58 = vmul.f32 0.6931472, %v3022_v49 }
 0x287   : > { %v1819_v16 = vmul.f32 0.6931472, %v3024_v47  ;;  %v2132_v51 = vsub.f32 %v1889_v39, %v3849_v23  ;;  %v4408_v23 = vld [vmem:[#allocation31_spill] sm:$0xff] }
 0x288   : > { %v1706_v33 = vpop.xlane.xlu0 %1705 }
 0x289   : > { %3029 = vlog2.f32 %v1706_v33  ;;  %v1887_v41 = vadd.f32 %v1819_v16, %v3857_v2  ;;  %v4141_v2 = vrot.slane %v2122_v15, %v4044_v10  ;;  %v2343_v9 = vrot.slane %v2132_v51, %v4047_v63  ;;  %v4417_v15 = vld [vmem:[#allocation40_spill] sm:$0xff]  ;;  %v4419_v51 = vld [vmem:[#allocation47_spill] sm:$0xff] }
 0x28d   : > { %v3026_v42 = vpop.eup %3025 }
 0x28e   : > { %v1817_v62 = vmul.f32 0.6931472, %v3026_v42 }
 0x290   : > { %v1721_v34 = vpop.xlane.xlu1 %1720 }
 0x292   : > { %v3028_v59 = vpop.eup %3027 }
 0x293   : > { %v1813_v17 = vmul.f32 0.6931472, %v3028_v59  ;;  %v4413_v59 = vld [vmem:[#allocation30_spill] sm:$0xff] }
 0x294   : > { %v1718_v44 = vpop.xlane.xlu0 %1717 }
 0x295   : > { %v1715_v52 = vpop.xlane.xlu1 %1714  ;;  %v1884_v53 = vadd.f32 %v1813_v17, %v3884_v25  ;;  %v4409_v25 = vld [vmem:[#allocation29_spill] sm:$0xff] }
 0x296   : > { %v3030_v43 = vpop.eup %3029 }
 0x297   : > { %v1821_v5 = vmul.f32 0.6931472, %v3030_v43 }
 0x298   : > { %v1712_v36 = vpop.xlane.xlu0 %1711 }
 0x299   : > { %3031 = vlog2.f32 %v1712_v36  ;;  %v1888_v33 = vadd.f32 %v1821_v5, %v3893_v48  ;;  %v4151_v48 = vadd.f32 %v1801_v58, %v3847_v54 }
 0x29a   : > { %3033 = vlog2.f32 %v1697_v26 }
 0x29b   : > { %3035 = vlog2.f32 %v1715_v52  ;;  %v4145_v52 = vadd.f32 %v1805_v45, %v4408_v23  ;;  %v2121_v43 = vsub.f32 %v4151_v48, %v4413_v59 }
 0x29c   : > { %3037 = vlog2.f32 %v1721_v34 }
 0x29d   : > { %3039 = vlog2.f32 %v1718_v44  ;;  %v4138_v44 = vadd.f32 %v1811_v50, %v3810_v20  ;;  %v4410_v20 = vld [vmem:[#allocation34_spill] sm:$0xff] }
 0x2a0   : > { %v1745_v11 = vpop.xlane.xlu1 %1744 }
 0x2a4   : > { %v1724_v37 = vpop.xlane.xlu0 %1723 }
 0x2a5   : > { %3041 = vlog2.f32 %v1724_v37  ;;  %v4148_v37 = vadd.f32 %v1807_v35, %v4409_v25  ;;  %v4422_v25 = vld [vmem:[#allocation52_spill] sm:$0xff] }
 0x2a6   : > { %v3032_v1 = vpop.eup %3031 }
 0x2a7   : > { %v3034_v40 = vpop.eup %3033  ;;  %v1825_v18 = vmul.f32 0.6931472, %v3032_v1  ;;  %v4414_v1 = vld [vmem:[#allocation35_spill] sm:$0xff] }
 0x2a8   : > { %v1736_v13 = vpop.xlane.xlu0 %1735  ;;  %v3036_v21 = vpop.eup %3035  ;;  %v1815_v19 = vmul.f32 0.6931472, %v3034_v40  ;;  %v4415_v40 = vld [vmem:[#allocation38_spill] sm:$0xff] }
 0x2a9   : > { %v3038_v22 = vpop.eup %3037  ;;  %v1890_v36 = vadd.f32 %v1825_v18, %v3921_v30  ;;  %v4411_v30 = vld [vmem:[#allocation33_spill] sm:$0xff]  ;;  %v4418_v18 = vld [vmem:[#allocation42_spill] sm:$0xff] }
 0x2aa   : > { %v3040_v26 = vpop.eup %3039  ;;  %v2127_v28 = vsub.f32 %v1884_v53, %v4411_v30  ;;  %v1831_v49 = vmul.f32 0.6931472, %v3038_v22 }
 0x2ab   : > { %v1829_v29 = vmul.f32 0.6931472, %v3040_v26  ;;  %v4420_v26 = vld [vmem:[#allocation12_spill] sm:$0xff] }
 0x2ac   : > { %v1739_v57 = vpop.xlane.xlu1 %1738  ;;  %v1893_v45 = vadd.f32 %v1831_v49, %v4417_v15  ;;  %v4425_v49 = vld [vmem:[#allocation54_spill] sm:$0xff] }
 0x2ad   : > { %v1730_v24 = vpop.xlane.xlu0 %1729 }
 0x2b0   : > { %v1733_v0 = vpop.xlane.xlu1 %1732 }
 0x2b1   : > { %3043 = vlog2.f32 %v1733_v0 }
 0x2b2   : > { %3045 = vlog2.f32 %v1727_v6  ;;  %v1827_v6 = vmul.f32 0.6931472, %v3036_v21  ;;  %v3042_v34 = vpop.eup %3041  ;;  %v2320_v21 = vrot.slane %v2127_v28, %v4040_v46 }
 0x2b3   : > { %3047 = vlog2.f32 %v1730_v24  ;;  %v2131_v24 = vsub.f32 %v1888_v33, %v3905_v56  ;;  %v1833_v42 = vmul.f32 0.6931472, %v3042_v34 }
 0x2b4   : > { %3049 = vlog2.f32 %v1745_v11  ;;  %v2130_v11 = vsub.f32 %v1887_v41, %v3871_v60  ;;  %v1891_v54 = vadd.f32 %v1827_v6, %v3914_v55  ;;  %v4412_v60 = vld [vmem:[#allocation43_spill] sm:$0xff]  ;;  %v4416_v55 = vld [vmem:[#allocation41_spill] sm:$0xff] }
 0x2b5   : > { %3051 = vlog2.f32 %v1736_v13  ;;  %v1886_v13 = vadd.f32 %v1817_v62, %v4410_v20  ;;  %v2133_v47 = vsub.f32 %v1890_v36, %v4412_v60  ;;  %v2338_v35 = vrot.slane %v2131_v24, %v4044_v10  ;;  %v4421_v36 = vld [vmem:[#allocation37_spill] sm:$0xff]  ;;  %v4423_v20 = vld [vmem:[#allocation36_spill] sm:$0xff] }
 0x2b6   : > { %3053 = vlog2.f32 %v1739_v57  ;;  %v1885_v57 = vadd.f32 %v1815_v19, %v3878_v4  ;;  %v2334_v3 = vrot.slane %v2130_v11, %v4040_v46  ;;  %v2134_v58 = vsub.f32 %v1891_v54, %v4418_v18 }
 0x2b7   : > { %v2129_v16 = vsub.f32 %v1886_v13, %v4414_v1  ;;  %v2348_v22 = vrot.slane %v2133_v47, %v4040_v46  ;;  %v1894_v53 = vadd.f32 %v1833_v42, %v4419_v51  ;;  %v4427_v47 = vld [vmem:[#allocation45_spill] sm:$0xff] }
 0x2b8   : > { %v1742_v8 = vpop.xlane.xlu0 %1741  ;;  %v2128_v56 = vsub.f32 %v1885_v57, %v4415_v40  ;;  %v2339_v57 = vsel %vm2210_vm2, %v2338_v35, %v2334_v3  ;;  %v2136_v42 = vsub.f32 %v1893_v45, %v4427_v47  ;;  %v4429_v3 = vld [vmem:[#allocation50_spill] sm:$0xff]  ;;  %v4432_v35 = vld [vmem:[#allocation39_spill] sm:$0xff] }
 0x2b9   : > { %3055 = vlog2.f32 %v1742_v8  ;;  %v1892_v8 = vadd.f32 %v1829_v29, %v4416_v55  ;;  %v2329_v11 = vrot.slane %v2129_v16, %v4047_v63  ;;  %v2344_v16 = vsel %vm2217_vm3, %v2343_v9, %v2339_v57 }
 0x2ba   : > { %3057 = vlog2.f32 %v4127_v61  ;;  %v2324_v34 = vrot.slane %v2128_v56, %v4044_v10  ;;  %v4430_v56 = vld [vmem:[#allocation11_spill] sm:$0xff] }
 0x2bb   : > { %v2135_v23 = vsub.f32 %v1892_v8, %v4421_v36 }
 0x2bc   : > { %v1763_v38 = vpop.xlane.xlu1 %1762 }
 0x2bd   : > { %v1754_v12 = vpop.xlane.xlu0 %1753  ;;  %v2357_v40 = vrot.slane %v2135_v23, %v4047_v63 }
 0x2be   : > { %v3044_v61 = vpop.eup %3043  ;;  %3059 = vlog2.f32 %v1754_v12 }
 0x2bf   : > { %v3046_v27 = vpop.eup %3045  ;;  %v1839_v4 = vmul.f32 0.6931472, %v3044_v61 }
 0x2c0   : > { %v1757_v0 = vpop.xlane.xlu1 %1756  ;;  %v3048_v32 = vpop.eup %3047  ;;  %v1835_v17 = vmul.f32 0.6931472, %v3046_v27  ;;  %v2352_v27 = vrot.slane %v2134_v58, %v4044_v10 }
 0x2c1   : > { %v1748_v14 = vpop.xlane.xlu0 %1747  ;;  %3061 = vlog2.f32 %v1757_v0  ;;  %v3050_v7 = vpop.eup %3049  ;;  %v1837_v50 = vmul.f32 0.6931472, %v3048_v32  ;;  %v1897_v33 = vadd.f32 %v1839_v4, %v4420_v26  ;;  %v2325_v0 = vsel %vm2210_vm2, %v2324_v34, %v2320_v21  ;;  %v4424_v32 = vld [vmem:[#allocation44_spill] sm:$0xff]  ;;  %v4434_v26 = vld [vmem:[#allocation49_spill] sm:$0xff] }
 0x2c2   : > { %3063 = vlog2.f32 %v1748_v14  ;;  %v3052_v39 = vpop.eup %3051  ;;  %v1895_v13 = vadd.f32 %v1835_v17, %v4423_v20  ;;  %v2137_v24 = vsub.f32 %v1894_v53, %v4424_v32  ;;  %v4426_v14 = vld [vmem:[#allocation55_spill] sm:$0xff]  ;;  %v2353_v4 = vsel %vm2210_vm2, %v2352_v27, %v2348_v22  ;;  %v4436_v34 = vld [vmem:[#allocation53_spill] sm:$0xff]  ;;  %v4437_v20 = vld [vmem:[#allocation32_spill] sm:$0xff] }
 0x2c3   : > { %3065 = vlog2.f32 %v1763_v38  ;;  %v3054_v5 = vpop.eup %3053  ;;  %v1847_v38 = vmul.f32 0.6931472, %v3050_v7  ;;  %v1841_v6 = vmul.f32 0.6931472, %v3052_v39  ;;  %v1896_v61 = vadd.f32 %v1837_v50, %v4422_v25  ;;  %v4428_v7 = vld [vmem:[#allocation46_spill] sm:$0xff]  ;;  %v4431_v17 = vld [vmem:[#allocation51_spill] sm:$0xff] }
 0x2c4   : > { %v1843_v48 = vmul.f32 0.6931472, %v3054_v5  ;;  %v2140_v54 = vsub.f32 %v1897_v33, %v4425_v49  ;;  %v2292_v50 = vrot.slane %v2121_v43, %v4040_v46  ;;  %v2330_v21 = vsel %vm2217_vm3, %v2329_v11, %v2325_v0 }
 0x2c5   : > { %v1760_v41 = vpop.xlane.xlu0 %1759  ;;  %v1751_v62 = vpop.xlane.xlu1 %1750  ;;  %v1901_v59 = vadd.f32 %v1847_v38, %v4428_v7  ;;  %v1898_v1 = vadd.f32 %v1841_v6, %v4429_v3  ;;  %v2139_v39 = vsub.f32 %v1896_v61, %v4430_v56  ;;  %v2138_v15 = vsub.f32 %v1895_v13, %v4432_v35  ;;  %v4435_v38 = vld [vmem:[#allocation48_spill] sm:$0xff]  ;;  %v4442_v35 = vld [vmem:[#allocation61_spill] sm:$0xff] }
 0x2c6   : > { %v3056_v19 = vpop.eup %3055  ;;  %3067 = vlog2.f32 %v1760_v41  ;;  %v1899_v55 = vadd.f32 %v1843_v48, %v4431_v17  ;;  %v2358_v9 = vsel %vm2217_vm3, %v2357_v40, %v2353_v4  ;;  %v2366_v41 = vrot.slane %v2137_v24, %v4044_v10 }
 0x2c7   : > { %v1845_v12 = vmul.f32 0.6931472, %v3056_v19  ;;  %3069 = vlog2.f32 %v1751_v62  ;;  %v3058_v29 = vpop.eup %3057  ;;  %v2380_v62 = vrot.slane %v2140_v54, %v4044_v10  ;;  %v4433_v19 = vld [vmem:[#allocation56_spill] sm:$0xff]  ;;  %v2443_v43 = vsel %vm2429_vm4, %v2344_v16, %v2330_v21 }
 0x2c8   : > { %v1809_v5 = vmul.f32 0.6931472, %v3058_v29  ;;  %v2362_v53 = vrot.slane %v2136_v42, %v4040_v46  ;;  %v2144_v33 = vsub.f32 %v1901_v59, %v4434_v26  ;;  %v2141_v6 = vsub.f32 %v1898_v1, %v4435_v38  ;;  %v4440_v1 = vld [vmem:[#allocation59_spill] sm:$0xff] }
 0x2c9   : > { %v4181_v30 = vpop.xlane.xlu0 %2086  ;;  %v4183_v28 = vpop.xlane.xlu1 %2089  ;;  %v1900_v60 = vadd.f32 %v1845_v12, %v4426_v14  ;;  %v2376_v12 = vrot.slane %v2139_v39, %v4040_v46  ;;  %v2142_v36 = vsub.f32 %v1899_v55, %v4436_v34  ;;  %v2371_v48 = vrot.slane %v2138_v15, %v4047_v63 }
 0x2ca   : > { %v2297_v11 = vsel %vm2210_vm2, %v4141_v2, %v2292_v50  ;;  %v1882_v13 = vadd.f32 %v1809_v5, %v4437_v20  ;;  %v2444_v27 = vsel %vm2431_vm5, %v2358_v9, %v2443_v43  ;;  %v2367_v0 = vsel %vm2210_vm2, %v2366_v41, %v2362_v53  ;;  %v4441_v50 = vld [vmem:[#allocation58_spill] sm:$0xff]  ;;  %v4444_v43 = vld [vmem:[#allocation57_spill] sm:$0xff] }
 0x2cb   : > { %v3060_v8 = vpop.eup %3059  ;;  %v2143_v22 = vsub.f32 %v1900_v60, %v4433_v19  ;;  %v2381_v32 = vsel %vm2210_vm2, %v2380_v62, %v2376_v12  ;;  %v2399_v2 = vrot.slane %v2144_v33, %v4047_v63  ;;  %v2385_v14 = vrot.slane %v2141_v6, %v4047_v63  ;;  %v4439_v60 = vld [vmem:[#allocation60_spill] sm:$0xff] }
 0x2cc   : > { %v1853_v49 = vmul.f32 0.6931472, %v3060_v8  ;;  %v2390_v7 = vrot.slane %v2142_v36, %v4040_v46  ;;  %v2372_v40 = vsel %vm2217_vm3, %v2371_v48, %v2367_v0 }
 0x2cd   : > { %v2021_v45 = vpop.xlane.xlu0 %2020  ;;  %v4200_v18 = vpop.xlane.xlu1 %2023  ;;  %v2394_v24 = vrot.slane %v2143_v22, %v4044_v10  ;;  %v2386_v17 = vsel %vm2217_vm3, %v2385_v14, %v2381_v32  ;;  %v2445_v19 = vsel %vm2433_vm6, %v2372_v40, %v2444_v27 }
 0x2ce   : > { %v3062_v58 = vpop.eup %3061  ;;  %v2123_v42 = vsub.f32 %v4145_v52, %v2021_v45  ;;  %v1904_v5 = vadd.f32 %v1853_v49, %v4441_v50  ;;  %v2124_v62 = vsub.f32 %v4148_v37, %v4200_v18  ;;  %v2446_v38 = vsel %vm2435_vm7, %v2386_v17, %v2445_v19 }
 0x2cf   : > { %v3064_v51 = vpop.eup %3063  ;;  %v1855_v25 = vmul.f32 0.6931472, %v3062_v58  ;;  %v2395_v52 = vsel %vm2210_vm2, %v2394_v24, %v2390_v7  ;;  %v4443_v58 = vld [vmem:[#allocation62_spill] sm:$0xff] }
 0x2d0   : > { %v1849_v23 = vmul.f32 0.6931472, %v3064_v51  ;;  %v3066_v61 = vpop.eup %3065  ;;  %v2301_v41 = vrot.slane %v2123_v42, %v4047_v63 }
 0x2d1   : > { %v2027_v57 = vpop.xlane.xlu0 %2026  ;;  %v2093_v29 = vpop.xlane.xlu1 %2092  ;;  %v1859_v59 = vmul.f32 0.6931472, %v3066_v61  ;;  %v1905_v16 = vadd.f32 %v1855_v25, %v4440_v1  ;;  %v2306_v61 = vrot.slane %v2124_v62, %v4040_v46 }
 0x2d2   : > { %v1902_v47 = vadd.f32 %v1849_v23, %v4439_v60  ;;  %v2125_v39 = vsub.f32 %v1882_v13, %v2027_v57  ;;  %v2147_v22 = vsub.f32 %v1904_v5, %v2093_v29  ;;  %v2302_v25 = vsel %vm2217_vm3, %v2301_v41, %v2297_v11 }
 0x2d3   : > { %v3068_v54 = vpop.eup %3067  ;;  %v1907_v53 = vadd.f32 %v1859_v59, %v4444_v43 }
 0x2d4   : > { %v3070_v4 = vpop.eup %3069  ;;  %v1857_v3 = vmul.f32 0.6931472, %v3068_v54  ;;  %v2145_v45 = vsub.f32 %v1902_v47, %v4181_v30  ;;  %v2310_v33 = vrot.slane %v2125_v39, %v4044_v10  ;;  %v2400_v30 = vsel %vm2217_vm3, %v2399_v2, %v2395_v52 }
 0x2d5   : > { %v1851_v56 = vmul.f32 0.6931472, %v3070_v4  ;;  %v2096_v55 = vpop.xlane.xlu0 %2095  ;;  %v2099_v8 = vpop.xlane.xlu1 %2098  ;;  %v2413_v48 = vrot.slane %v2147_v22, %v4047_v63  ;;  %v2447_v29 = vsel %vm2437_vm8, %v2400_v30, %v2446_v38 }
 0x2d6   : > { %v2148_v21 = vsub.f32 %v1905_v16, %v2096_v55  ;;  %v1906_v15 = vadd.f32 %v1857_v3, %v4442_v35  ;;  %v2404_v23 = vrot.slane %v2145_v45, %v4040_v46 }
 0x2d7   : > { %v1903_v9 = vadd.f32 %v1851_v56, %v4443_v58 }
 0x2d8   : > { %v2149_v51 = vsub.f32 %v1906_v15, %v2099_v8  ;;  %v2418_v34 = vrot.slane %v2148_v21, %v4040_v46  ;;  %v2440_v46 = vsel %vm2439_vm9, %v2302_v25, %v4125_v31 }
 0x2d9   : > { %v2146_v26 = vsub.f32 %v1903_v9, %v4183_v28  ;;  %v2030_v6 = vpop.xlane.xlu0 %2029  ;;  %v2102_v12 = vpop.xlane.xlu1 %2101 }
 0x2da   : > { %v2422_v37 = vrot.slane %v2149_v51, %v4044_v10  ;;  %v2126_v18 = vsub.f32 %v4138_v44, %v2030_v6  ;;  %v2150_v36 = vsub.f32 %v1907_v53, %v2102_v12  ;;  %v2311_v44 = vsel %vm2210_vm2, %v2310_v33, %v2306_v61 }
 0x2db   : > { %v2408_v28 = vrot.slane %v2146_v26, %v4044_v10 }
 0x2dc   : > { %v2423_v20 = vsel %vm2210_vm2, %v2422_v37, %v2418_v34  ;;  %v2315_v13 = vrot.slane %v2126_v18, %v4047_v63  ;;  %v2427_v57 = vrot.slane %v2150_v36, %v4047_v63 }
 0x2dd   : > { %v2409_v27 = vsel %vm2210_vm2, %v2408_v28, %v2404_v23 }
 0x2de   : > { %v2414_v10 = vsel %vm2217_vm3, %v2413_v48, %v2409_v27  ;;  %v2316_v11 = vsel %vm2217_vm3, %v2315_v13, %v2311_v44  ;;  %v2428_v0 = vsel %vm2217_vm3, %v2427_v57, %v2423_v20 }
 0x2df   : > { %v2448_v63 = vsel %vm2439_vm9, %v2414_v10, %v2447_v29  ;;  %v2442_v32 = vsel %vm2441_vm10, %v2316_v11, %v2440_v46 }
 0x2e0   : > { %2452 = vst.msk [vmem:[%s236_s15] sm:$0xff] %vm1331_vm1, %v2442_v32  ;;  %v2449_v24 = vsel %vm2441_vm10, %v2428_v0, %v2448_v63 }
 0x2e1   : > { %2453 = vst.msk [vmem:[%s236_s15 + $0x8] sm:$0xff] %vm1331_vm1, %v2449_v24 }
 0x2e2 PF: > { %s20_s20 = sadd.s32 1, %s3094_s20  }
 0x2e3   : > { %p17_p12 = scmp.ge.s32.totalorder %s20_s20, 10  }
 0x2e5   :  { %19 = sbr.rel (!%p17_p12) target bundleno = 16 (0x10), region = 68 }

</bundles_post_ra>
